<compile_context>
chip_gen: v7x
topology: tpu7x:2x2x1
jax: 0.10.0
libtpu: 0.0.40
codegen_flags: <defaults>
</compile_context>

<pallas_src>
import functools

import jax
import jax.numpy as jnp
from jax import lax
from jax.experimental import pallas as pl
from jax.experimental.pallas import tpu as pltpu


def _cdiv(a, b):
    return -(-a // b)


def _linkpred_kernel(xi_ref, xj_ref,
                     w1_ref, b1_ref,
                     w2_ref, b2_ref,
                     w3_ref, b3_ref,
                     o_ref):
    f32 = jnp.float32
    hi = lax.Precision.HIGHEST

    # x = x_i * x_j  (upcast to f32: exact math, and v5e's VPU has no bf16 arithmetic).
    h = xi_ref[...].astype(f32) * xj_ref[...].astype(f32)

    # Hidden layers: Linear -> ReLU (dropout = identity in eval mode).  Weights are
    # block-diagonal kron(I_p, W), so the packed-lane layout is preserved; matmuls run
    # in f32 on the MXU (compute has huge slack -- the kernel is HBM-bound).
    h = jnp.dot(h, w1_ref[...], preferred_element_type=f32, precision=hi) + b1_ref[...]
    h = jnp.maximum(h, 0.0)
    h = jnp.dot(h, w2_ref[...], preferred_element_type=f32, precision=hi) + b2_ref[...]
    h = jnp.maximum(h, 0.0)

    # Output layer (out_channels == 1): contract the packed feature axis of both
    # operands -> (p, tile_p).  tile_p is the lane axis, so the stores and the
    # writeback DMA are lane-dense; edge order is restored by a cheap transpose on the
    # 4 B/edge result in the wrapper.
    z = lax.dot_general(w3_ref[...], h, (((1,), (1,)), ((), ())),
                        preferred_element_type=f32, precision=hi)
    o_ref[0] = jax.nn.sigmoid(z + b3_ref[...])


def _pick_pack(n_edges, in_ch, hid):
    """Lane-packing factor p: pack p consecutive edges into one VMEM row so the
    HBM->VMEM DMA and the VPU product are lane-dense (in_ch=32 alone would use only
    32/128 lanes and 4x the VMEM).  Falls back to p=1 when shapes don't allow it."""
    if 0 < in_ch <= 128 and 128 % in_ch == 0:
        p = 128 // in_ch
    else:
        p = 1
    # p must divide the batch (free reshape) and keep the kron'd weights small.
    while p > 1 and (n_edges % p != 0 or p * hid > 512):
        p //= 2
    return max(p, 1)


def _pick_tile_p(rows_p, max_tile_p):
    """Packed-row tile: one exact block for small batches (no padding at all);
    otherwise a multiple of 8 sublanes, nudging the step count to be even so v7x's
    two TensorCores split the 'parallel' grid axis evenly (harmless on v5e/v6e)."""
    if rows_p <= max_tile_p:
        return rows_p
    unit = 8
    max_units = max(1, max_tile_p // unit)
    k = _cdiv(rows_p, unit)
    grid = _cdiv(k, max_units)
    if grid % 2:
        grid += 1
    return min(max_units, _cdiv(k, grid)) * unit


@functools.partial(jax.jit, static_argnames=("tile_n",))
def link_predictor(x_i, x_j, params, *, tile_n=16384):
    """params = (w1, b1, w2, b2, w3, b3):
         w1: [in, hid]   w2: [hid, hid]     (x @ W layout)
         w3: [1, hid]                       (PyTorch [out, in] row, out_channels == 1)
         b1, b2: [1, hid]   b3: [1, 1]
       tile_n: edges per grid step (static).  Sweep 8192-32768; vmem_limit_bytes below
       covers that range on v5e / v6e / v7x."""
    w1, b1, w2, b2, w3, b3 = params
    n, in_ch = x_i.shape
    hid = w1.shape[1]
    assert w3.shape[0] == 1, "kernel is specialized for out_channels == 1"
    f32 = jnp.float32

    p = _pick_pack(n, in_ch, hid)
    w_in, w_hid = p * in_ch, p * hid
    rows_p = n // p

    # Free row-major reshapes (no pad, no cast, no extra HBM pass): the kernel streams
    # the caller's dtype and upcasts to f32 on the VPU.
    xi_p = x_i.reshape(rows_p, w_in)
    xj_p = x_j.reshape(rows_p, w_in)

    # Block-diagonal (kron) weights keep the packed layout through the MLP.  Params are
    # tiny, so promoting them to f32 (exact PyTorch math) costs nothing.
    eye_p = jnp.eye(p, dtype=f32)
    w1b = jnp.kron(eye_p, w1.astype(f32))                      # (w_in,  w_hid)
    w2b = jnp.kron(eye_p, w2.astype(f32))                      # (w_hid, w_hid)
    w3b = jnp.kron(eye_p, w3.astype(f32).reshape(1, hid))      # (p,     w_hid)
    b1b = jnp.tile(b1.astype(f32).reshape(1, hid), (1, p))     # (1, w_hid)
    b2b = jnp.tile(b2.astype(f32).reshape(1, hid), (1, p))     # (1, w_hid)
    b3f = b3.astype(f32).reshape(1, 1)

    tile_p = _pick_tile_p(rows_p, max(8, tile_n // p))
    grid_n = _cdiv(rows_p, tile_p)

    out3 = pl.pallas_call(
        _linkpred_kernel,
        out_shape=jax.ShapeDtypeStruct((grid_n, p, tile_p), f32),
        grid_spec=pltpu.PrefetchScalarGridSpec(
            num_scalar_prefetch=0,
            grid=(grid_n,),
            in_specs=[
                pl.BlockSpec((tile_p, w_in), lambda i: (i, 0)),    # x_i tile (packed)
                pl.BlockSpec((tile_p, w_in), lambda i: (i, 0)),    # x_j tile (packed)
                pl.BlockSpec((w_in, w_hid),  lambda i: (0, 0)),    # w1 (resident)
                pl.BlockSpec((1, w_hid),     lambda i: (0, 0)),    # b1
                pl.BlockSpec((w_hid, w_hid), lambda i: (0, 0)),    # w2
                pl.BlockSpec((1, w_hid),     lambda i: (0, 0)),    # b2
                pl.BlockSpec((p, w_hid),     lambda i: (0, 0)),    # w3 rows
                pl.BlockSpec((1, 1),         lambda i: (0, 0)),    # b3
            ],
            out_specs=pl.BlockSpec((1, p, tile_p), lambda i: (i, 0, 0)),
        ),
        compiler_params=pltpu.CompilerParams(
            dimension_semantics=("parallel",),
            # 2 inputs x 2 buffers x tile_p*w_in*4 B + a few f32 intermediates: ~15 MiB
            # at tile_n=16384, ~32 MiB at 32768 -- under this 48 MiB cap and inside
            # v7x's 64 MiB physical VMEM (v5e/v6e have 128 MiB).
            vmem_limit_bytes=48 * 1024 * 1024,
        ),
    )(xi_p, xj_p, w1b, b1b, w2b, b2b, w3b, b3f)

    # out3[i, g, r] = prediction for edge i*tile_p*p + r*p + g.  Restore edge order with
    # a transpose over the 4 B/edge result (~3% of the input HBM traffic), then drop the
    # tail rows that came from the (possibly partial) last block.
    out = jnp.swapaxes(out3, 1, 2).reshape(grid_n * tile_p * p, 1)
    return out[:n]


def init_params(key, in_channels, hidden_channels, out_channels):
    """Deterministic init mimicking torch.nn.Linear (uniform +-1/sqrt(fan_in)).
    w1/w2 are returned in [in, out] layout; w3 in PyTorch [out, in] layout."""
    def linear(key, fan_in, fan_out, transpose):
        kw, kb = jax.random.split(key)
        bound = 1.0 / jnp.sqrt(jnp.float32(fan_in))
        shape = (fan_in, fan_out) if transpose else (fan_out, fan_in)
        w = jax.random.uniform(kw, shape, jnp.float32, -bound, bound)
        b = jax.random.uniform(kb, (1, fan_out), jnp.float32, -bound, bound)
        return w, b

    k1, k2, k3 = jax.random.split(key, 3)
    w1, b1 = linear(k1, in_channels, hidden_channels, transpose=True)
    w2, b2 = linear(k2, hidden_channels, hidden_channels, transpose=True)
    w3, b3 = linear(k3, hidden_channels, out_channels, transpose=False)
    return (w1, b1, w2, b2, w3, b3)


def link_predictor_ref(x_i, x_j, params):
    """Plain-JAX f32 reference (eval-mode LinkPredictor.forward)."""
    w1, b1, w2, b2, w3, b3 = params
    hi = lax.Precision.HIGHEST
    h = x_i.astype(jnp.float32) * x_j.astype(jnp.float32)
    h = jnp.maximum(jnp.dot(h, w1, precision=hi) + b1, 0.0)
    h = jnp.maximum(jnp.dot(h, w2, precision=hi) + b2, 0.0)
    z = jnp.dot(h, w3.T, precision=hi) + b3
    return jax.nn.sigmoid(z)


if __name__ == "__main__":
    # LinkPredictor(in_channels=32, hidden_channels=32, out_channels=1,
    #               num_layers=3, dropout=...)  -- eval-mode forward.
    in_channels, hidden_channels, out_channels = 32, 32, 1
    n_edges = 300  # small demo batch; 300 % 4 == 0 -> the packed (lane-dense) path runs

    key = jax.random.PRNGKey(0)
    kp, ki, kj = jax.random.split(key, 3)
    params = init_params(kp, in_channels, hidden_channels, out_channels)
    x_i = jax.random.normal(ki, (n_edges, in_channels), jnp.float32)
    x_j = jax.random.normal(kj, (n_edges, in_channels), jnp.float32)

    ref = jax.block_until_ready(link_predictor_ref(x_i, x_j, params))

    # Default tile: a single grid step for this small batch.
    out = jax.block_until_ready(link_predictor(x_i, x_j, params))
    assert out.shape == (n_edges, out_channels)
    assert bool(jnp.all(jnp.isfinite(out)))
    assert jnp.allclose(out, ref, atol=5e-3, rtol=5e-3), \
        float(jnp.max(jnp.abs(out - ref)))

    # Tiny tile: exercises the multi-step grid and the partial tail block (no wrapper pad).
    out_t = jax.block_until_ready(link_predictor(x_i, x_j, params, tile_n=128))
    assert jnp.allclose(out_t, ref, atol=5e-3, rtol=5e-3), \
        float(jnp.max(jnp.abs(out_t - ref)))

    # Odd batch size: exercises the unpacked (p == 1) fallback path.
    out_o = jax.block_until_ready(link_predictor(x_i[:299], x_j[:299], params))
    assert out_o.shape == (299, out_channels)
    assert jnp.allclose(out_o, ref[:299], atol=5e-3, rtol=5e-3), \
        float(jnp.max(jnp.abs(out_o - ref[:299])))

    print("KERNEL_OK")
</pallas_src>

<mosaic_0001>
module attributes {stable_mosaic.version = 11 : i64} {
  func.func @_linkpred_kernel(%arg0: i32, %arg1: memref<75x128xf32, #tpu.memory_space<vmem>>, %arg2: memref<75x128xf32, #tpu.memory_space<vmem>>, %arg3: memref<128x128xf32, #tpu.memory_space<vmem>>, %arg4: memref<1x128xf32, #tpu.memory_space<vmem>>, %arg5: memref<128x128xf32, #tpu.memory_space<vmem>>, %arg6: memref<1x128xf32, #tpu.memory_space<vmem>>, %arg7: memref<4x128xf32, #tpu.memory_space<vmem>>, %arg8: memref<1x1xf32, #tpu.memory_space<vmem>>, %arg9: memref<1x4x75xf32, #tpu.memory_space<vmem>>) attributes {dimension_semantics = [#tpu.dimension_semantics<parallel>], iteration_bounds = array<i64: 1>, scalar_prefetch = 0 : i64, scratch_operands = 0 : i64, tpu.core_type = #tpu.core_type<tc>, window_params = [{transform_indices = @transform_0, window_bounds = array<i64: 75, 128>}, {transform_indices = @transform_1, window_bounds = array<i64: 75, 128>}, {pipeline_mode = #tpu.pipeline_mode<synchronous>, transform_indices = @transform_2, window_bounds = array<i64: 128, 128>}, {pipeline_mode = #tpu.pipeline_mode<synchronous>, transform_indices = @transform_3, window_bounds = array<i64: 1, 128>}, {pipeline_mode = #tpu.pipeline_mode<synchronous>, transform_indices = @transform_4, window_bounds = array<i64: 128, 128>}, {pipeline_mode = #tpu.pipeline_mode<synchronous>, transform_indices = @transform_5, window_bounds = array<i64: 1, 128>}, {pipeline_mode = #tpu.pipeline_mode<synchronous>, transform_indices = @transform_6, window_bounds = array<i64: 4, 128>}, {pipeline_mode = #tpu.pipeline_mode<synchronous>, transform_indices = @transform_7, window_bounds = array<i64: 1, 1>}, {transform_indices = @transform_8, window_bounds = array<i64: 1, 4, 75>}]} {
    %c0 = arith.constant 0 : index
    %c0_0 = arith.constant 0 : index
    %0 = vector.load %arg1[%c0, %c0_0] : memref<75x128xf32, #tpu.memory_space<vmem>>, vector<75x128xf32>
    %c0_1 = arith.constant 0 : index
    %c0_2 = arith.constant 0 : index
    %1 = vector.load %arg2[%c0_1, %c0_2] : memref<75x128xf32, #tpu.memory_space<vmem>>, vector<75x128xf32>
    %2 = arith.mulf %0, %1 : vector<75x128xf32>
    %c0_3 = arith.constant 0 : index
    %c0_4 = arith.constant 0 : index
    %3 = vector.load %arg3[%c0_3, %c0_4] : memref<128x128xf32, #tpu.memory_space<vmem>>, vector<128x128xf32>
    %cst = arith.constant dense<0.000000e+00> : vector<75x128xf32>
    %4 = tpu.matmul %2, %3, %cst {dimension_numbers = #tpu.dot_dimension_numbers<[1], [0], [0], [1], [0, 0, 1, 1], [], []>, precision = #tpu.contract_precision<fp32>} : vector<75x128xf32>, vector<128x128xf32>, vector<75x128xf32> -> vector<75x128xf32>
    %c0_5 = arith.constant 0 : index
    %c0_6 = arith.constant 0 : index
    %5 = vector.load %arg4[%c0_5, %c0_6] : memref<1x128xf32, #tpu.memory_space<vmem>>, vector<1x128xf32>
    %6 = vector.broadcast %5 : vector<1x128xf32> to vector<75x128xf32>
    %7 = arith.addf %4, %6 : vector<75x128xf32>
    %cst_7 = arith.constant 0.000000e+00 : f32
    %8 = vector.broadcast %cst_7 : f32 to vector<75x128xf32>
    %9 = arith.maximumf %7, %8 : vector<75x128xf32>
    %c0_8 = arith.constant 0 : index
    %c0_9 = arith.constant 0 : index
    %10 = vector.load %arg5[%c0_8, %c0_9] : memref<128x128xf32, #tpu.memory_space<vmem>>, vector<128x128xf32>
    %cst_10 = arith.constant dense<0.000000e+00> : vector<75x128xf32>
    %11 = tpu.matmul %9, %10, %cst_10 {dimension_numbers = #tpu.dot_dimension_numbers<[1], [0], [0], [1], [0, 0, 1, 1], [], []>, precision = #tpu.contract_precision<fp32>} : vector<75x128xf32>, vector<128x128xf32>, vector<75x128xf32> -> vector<75x128xf32>
    %c0_11 = arith.constant 0 : index
    %c0_12 = arith.constant 0 : index
    %12 = vector.load %arg6[%c0_11, %c0_12] : memref<1x128xf32, #tpu.memory_space<vmem>>, vector<1x128xf32>
    %13 = vector.broadcast %12 : vector<1x128xf32> to vector<75x128xf32>
    %14 = arith.addf %11, %13 : vector<75x128xf32>
    %cst_13 = arith.constant 0.000000e+00 : f32
    %15 = vector.broadcast %cst_13 : f32 to vector<75x128xf32>
    %16 = arith.maximumf %14, %15 : vector<75x128xf32>
    %c0_14 = arith.constant 0 : index
    %c0_15 = arith.constant 0 : index
    %17 = vector.load %arg7[%c0_14, %c0_15] : memref<4x128xf32, #tpu.memory_space<vmem>>, vector<4x128xf32>
    %cst_16 = arith.constant dense<0.000000e+00> : vector<4x75xf32>
    %18 = tpu.matmul %17, %16, %cst_16 {dimension_numbers = #tpu.dot_dimension_numbers<[1], [1], [0], [0], [0, 0, 1, 0], [], []>, precision = #tpu.contract_precision<fp32>} : vector<4x128xf32>, vector<75x128xf32>, vector<4x75xf32> -> vector<4x75xf32>
    %c0_17 = arith.constant 0 : index
    %c0_18 = arith.constant 0 : index
    %19 = vector.load %arg8[%c0_17, %c0_18] : memref<1x1xf32, #tpu.memory_space<vmem>>, vector<1x1xf32>
    %20 = vector.broadcast %19 : vector<1x1xf32> to vector<4x75xf32>
    %21 = arith.addf %18, %20 : vector<4x75xf32>
    %22 = arith.negf %21 : vector<4x75xf32>
    %23 = math.exp %22 : vector<4x75xf32>
    %cst_19 = arith.constant 1.000000e+00 : f32
    %24 = vector.broadcast %cst_19 : f32 to vector<4x75xf32>
    %25 = arith.addf %24, %23 : vector<4x75xf32>
    %26 = arith.divf %24, %25 : vector<4x75xf32>
    %c0_20 = arith.constant 0 : index
    %c0_21 = arith.constant 0 : index
    %c0_22 = arith.constant 0 : index
    %27 = vector.load %arg9[%c0_20, %c0_21, %c0_22] : memref<1x4x75xf32, #tpu.memory_space<vmem>>, vector<1x4x75xf32>
    %28 = vector.shape_cast %27 : vector<1x4x75xf32> to vector<4x75xf32>
    %29 = vector.shape_cast %26 : vector<4x75xf32> to vector<1x4x75xf32>
    tpu.vector_store %arg9[%c0_20, %c0_21, %c0_22], %29 {strides = array<i32>} : memref<1x4x75xf32, #tpu.memory_space<vmem>>, vector<1x4x75xf32>,
    return
  }
  func.func @transform_0(%arg0: i32) -> (i32, i32) {
    %c0_i32 = arith.constant 0 : i32
    %c0_i32_0 = arith.constant 0 : i32
    return %arg0, %c0_i32 : i32, i32
  }
  func.func @transform_1(%arg0: i32) -> (i32, i32) {
    %c0_i32 = arith.constant 0 : i32
    %c0_i32_0 = arith.constant 0 : i32
    return %arg0, %c0_i32 : i32, i32
  }
  func.func @transform_2(%arg0: i32) -> (i32, i32) {
    %c0_i32 = arith.constant 0 : i32
    %c0_i32_0 = arith.constant 0 : i32
    %c0_i32_1 = arith.constant 0 : i32
    return %c0_i32, %c0_i32_0 : i32, i32
  }
  func.func @transform_3(%arg0: i32) -> (i32, i32) {
    %c0_i32 = arith.constant 0 : i32
    %c0_i32_0 = arith.constant 0 : i32
    %c0_i32_1 = arith.constant 0 : i32
    return %c0_i32, %c0_i32_0 : i32, i32
  }
  func.func @transform_4(%arg0: i32) -> (i32, i32) {
    %c0_i32 = arith.constant 0 : i32
    %c0_i32_0 = arith.constant 0 : i32
    %c0_i32_1 = arith.constant 0 : i32
    return %c0_i32, %c0_i32_0 : i32, i32
  }
  func.func @transform_5(%arg0: i32) -> (i32, i32) {
    %c0_i32 = arith.constant 0 : i32
    %c0_i32_0 = arith.constant 0 : i32
    %c0_i32_1 = arith.constant 0 : i32
    return %c0_i32, %c0_i32_0 : i32, i32
  }
  func.func @transform_6(%arg0: i32) -> (i32, i32) {
    %c0_i32 = arith.constant 0 : i32
    %c0_i32_0 = arith.constant 0 : i32
    %c0_i32_1 = arith.constant 0 : i32
    return %c0_i32, %c0_i32_0 : i32, i32
  }
  func.func @transform_7(%arg0: i32) -> (i32, i32) {
    %c0_i32 = arith.constant 0 : i32
    %c0_i32_0 = arith.constant 0 : i32
    %c0_i32_1 = arith.constant 0 : i32
    return %c0_i32, %c0_i32_0 : i32, i32
  }
  func.func @transform_8(%arg0: i32) -> (i32, i32, i32) {
    %c0_i32 = arith.constant 0 : i32
    %c0_i32_0 = arith.constant 0 : i32
    %c0_i32_1 = arith.constant 0 : i32
    return %arg0, %c0_i32, %c0_i32_0 : i32, i32, i32
  }
}

</mosaic_0001>

<bundles_post_ra>
// kernel: link_predictor.1
= control target key start
LH: loop header
LB: loop body
LE: loop exit
PB: predicated region body
PF: predicated region fallthrough
CT: control target
= control target key end

     0   :  { %vm4467_vm0 = vmmov 0   ;;  %vm2763_vm1 = vcmask 609280   ;;  %s5766_s2 = inlined_call_operand.vmem [shape: f32[128,128], index: 2, kind: input, shape index: {}]   ;;  %s5767_s0 = inlined_call_operand.vmem [shape: f32[75,128], index: 0, kind: input, shape index: {}]   ;;  %s5768_s1 = inlined_call_operand.vmem [shape: f32[75,128], index: 1, kind: input, shape index: {}]   ;;  %s5769_s4 = inlined_call_operand.vmem [shape: f32[128,128], index: 4, kind: input, shape index: {}]   ;;  %s5770_s3 = inlined_call_operand.vmem [shape: f32[1,128], index: 3, kind: input, shape index: {}]   ;;  %s5771_s5 = inlined_call_operand.vmem [shape: f32[1,128], index: 5, kind: input, shape index: {}]   ;;  %s5772_s7 = inlined_call_operand.<no memory space> [shape: f32[1,1], index: 7, kind: input, shape index: {}]   ;;  %s5773_s6 = inlined_call_operand.vmem [shape: f32[4,128], index: 6, kind: input, shape index: {}]   ;;  %s5774_s8 = inlined_call_operand.vmem [shape: f32[1,4,75], index: 8, kind: output, shape index: {}]  }
   0x1   :  { %v61_v0 = vld [vmem:[%s5766_s2] sm:$0xff]  ;;  %v62_v1 = vld [vmem:[%s5766_s2 + $0x8] sm:$0xff]  ;;  %v63_v2 = vld [vmem:[%s5766_s2 + $0x10] sm:$0xff] }
   0x2   :  { %v85_v3 = vand.u32 4294901760, %v61_v0  ;;  %v88_v4 = vand.u32 4294901760, %v62_v1  ;;  %v64_v5 = vld [vmem:[%s5766_s2 + $0x18] sm:$0xff]  ;;  %v91_v6 = vand.u32 4294901760, %v63_v2  ;;  %v65_v7 = vld [vmem:[%s5766_s2 + $0x20] sm:$0xff]  ;;  %v66_v8 = vld [vmem:[%s5766_s2 + $0x28] sm:$0xff] }
   0x3   :  { %v94_v9 = vand.u32 4294901760, %v64_v5  ;;  %v97_v11 = vand.u32 4294901760, %v65_v7  ;;  %v100_v12 = vand.u32 4294901760, %v66_v8  ;;  %v4540_v14 = vld [vmem:[%s5766_s2 + $0x30] sm:$0xff]  ;;  %v4545_v15 = vld [vmem:[%s5766_s2 + $0x38] sm:$0xff]  ;;  %v31_v16 = vld [vmem:[%s5767_s0] sm:$0xff] }
   0x4   :  { %v4533_v10 = vpack.c.bf16 %v88_v4, %v85_v3  ;;  %v41_v17 = vld [vmem:[%s5768_s1] sm:$0xff]  ;;  %v32_v19 = vld [vmem:[%s5767_s0 + $0x8] sm:$0xff]  ;;  %v103_v22 = vand.u32 4294901760, %v4540_v14  ;;  %v106_v23 = vand.u32 4294901760, %v4545_v15  ;;  %v4578_v28 = vsub.f32 %v61_v0, %v85_v3  ;;  %v4587_v31 = vld [vmem:[%s5766_s2 + $0x50] sm:$0xff] }
   0x5   :  { %v4535_v13 = vpack.c.bf16 %v94_v9, %v91_v6  ;;  %v51_v18 = vmul.f32 %v41_v17, %v31_v16  ;;  %v42_v20 = vld [vmem:[%s5768_s1 + $0x8] sm:$0xff]  ;;  %v4562_v21 = vpack.c.bf16 %v100_v12, %v97_v11  ;;  %v4569_v24 = vld [vmem:[%s5766_s2 + $0x40] sm:$0xff]  ;;  %v4580_v29 = vsub.f32 %v62_v1, %v88_v4  ;;  %v4601_v36 = vld [vmem:[%s5766_s2 + $0x58] sm:$0xff] }
   0x6   :  { %3854 = vmatprep.subr.bf16.mxu0 %v4533_v10  ;;  %v4574_v25 = vld [vmem:[%s5766_s2 + $0x48] sm:$0xff]  ;;  %v52_v27 = vmul.f32 %v42_v20, %v32_v19  ;;  %v109_v30 = vand.u32 4294901760, %v4569_v24  ;;  %v4592_v33 = vsub.f32 %v63_v2, %v91_v6  ;;  %v4595_v34 = vpack.c.bf16 %v106_v23, %v103_v22  ;;  %v4612_v41 = vld [vmem:[%s5766_s2 + $0x60] sm:$0xff]  ;;  %v33_v50 = vld [vmem:[%s5767_s0 + $0x10] sm:$0xff] }
   0x7   :  { %3856 = vmatpush3.bf16.msra.mxu0 %v4533_v10  ;;  %v4576_v26 = vand.u32 4294901760, %v51_v18  ;;  %v112_v35 = vand.u32 4294901760, %v4574_v25  ;;  %v4605_v38 = vsub.f32 %v64_v5, %v94_v9  ;;  %v115_v40 = vand.u32 4294901760, %v4587_v31  ;;  %v4617_v42 = vld [vmem:[%s5766_s2 + $0x68] sm:$0xff]  ;;  %v43_v51 = vld [vmem:[%s5768_s1 + $0x10] sm:$0xff]  ;;  %v34_v59 = vld [vmem:[%s5767_s0 + $0x18] sm:$0xff] }
   0x8   :  { %3858 = vmatprep.subr.bf16.mxu0 %v4535_v13  ;;  %5840 = vst [vmem:[#allocation3_spill] sm:$0xff] %v4595_v34  ;;  %v4603_v37 = vand.u32 4294901760, %v52_v27  ;;  %v5784_v43 = vand.u32 4294901760, %v4578_v28  ;;  %v5781_v44 = vand.u32 4294901760, %v4580_v29  ;;  %v4621_v45 = vsub.f32 %v65_v7, %v97_v11  ;;  %v4647_v53 = vld [vmem:[%s5766_s2 + $0x70] sm:$0xff]  ;;  %v44_v60 = vld [vmem:[%s5768_s1 + $0x18] sm:$0xff] }
   0x9   :  { %v4590_v32 = vsub.f32 %v51_v18, %v4576_v26  ;;  %v118_v46 = vand.u32 4294901760, %v4601_v36  ;;  %v5780_v48 = vand.u32 4294901760, %v4592_v33  ;;  %v4629_v49 = vsub.f32 %v66_v8, %v100_v12  ;;  %v4664_v61 = vld [vmem:[%s5766_s2 + $0x78] sm:$0xff]  ;;  %v35_v2 = vld [vmem:[%s5767_s0 + $0x20] sm:$0xff] }
   0xa   :  { %v4642_v52 = vpack.c.bf16 %v112_v35, %v109_v30  ;;  %v4650_v54 = vsub.f32 %v52_v27, %v4603_v37  ;;  %v5779_v55 = vand.u32 4294901760, %v4605_v38  ;;  %v121_v56 = vand.u32 4294901760, %v4612_v41  ;;  %v45_v3 = vld [vmem:[%s5768_s1 + $0x20] sm:$0xff] }
   0xb   :  { %3860 = vmatpush3.bf16.msra.mxu0 %v4535_v13  ;;  %v5776_v39 = vand.u32 4294901760, %v4590_v32  ;;  %v124_v57 = vand.u32 4294901760, %v4617_v42  ;;  %v269_v62 = vsub.f32 %v4578_v28, %v5784_v43  ;;  %v276_v63 = vsub.f32 %v4580_v29, %v5781_v44 }
   0xc   :  { %3862 = vmatprep.subr.bf16.mxu0 %v4562_v21  ;;  %5841 = vst [vmem:[#allocation4_spill] sm:$0xff] %v4642_v52  ;;  %v5778_v0 = vand.u32 4294901760, %v4621_v45  ;;  %v53_v1 = vmul.f32 %v43_v51, %v33_v50  ;;  %v4684_v4 = vpack.c.bf16 %v118_v46, %v115_v40  ;;  %v5788_v5 = vand.u32 4294901760, %v4647_v53  ;;  %v36_v51 = vld [vmem:[%s5767_s0 + $0x28] sm:$0xff] }
   0xd   :  { %v168_v47 = vsub.f32 %v4590_v32, %v5776_v39  ;;  %v283_v6 = vsub.f32 %v4592_v33, %v5780_v48  ;;  %v5777_v7 = vand.u32 4294901760, %v4629_v49  ;;  %v5775_v8 = vand.u32 4294901760, %v4650_v54 }
   0xe   :  { %5842 = vst [vmem:[#allocation5_spill] sm:$0xff] %v4684_v4  ;;  %v290_v9 = vsub.f32 %v4605_v38, %v5779_v55  ;;  %v4696_v11 = vand.u32 4294901760, %v53_v1  ;;  %v54_v12 = vmul.f32 %v44_v60, %v34_v59  ;;  %v5785_v16 = vand.u32 4294901760, %v4664_v61 }
   0xf   :  { %3864 = vmatpush3.bf16.msra.mxu0 %v4562_v21  ;;  %v169_v58 = vand.u32 4294901760, %v168_v47  ;;  %v4700_v17 = vsub.f32 %v4540_v14, %v103_v22  ;;  %v4703_v18 = vsub.f32 %v4545_v15, %v106_v23  ;;  %v55_v19 = vmul.f32 %v45_v3, %v35_v2 }
  0x10   :  { %3866 = vmatprep.subr.bf16.mxu0 %v4595_v34  ;;  %v270_v20 = vand.u32 4294901760, %v269_v62  ;;  %v277_v27 = vand.u32 4294901760, %v276_v63  ;;  %v297_v47 = vsub.f32 %v4621_v45, %v5778_v0  ;;  %v4708_v50 = vand.u32 4294901760, %v54_v12  ;;  %v37_v62 = vld [vmem:[%s5767_s0 + $0x30] sm:$0xff] }
  0x11   :  { %3183 = vmatprep.mubr.f32.mxu0 %v169_v58  ;;  %v4715_v14 = vpack.c.bf16 %v124_v57, %v121_v56  ;;  %v4718_v15 = vsub.f32 %v53_v1, %v4696_v11  ;;  %v4723_v22 = vsub.f32 %v4569_v24, %v109_v30  ;;  %v4725_v23 = vand.u32 4294901760, %v55_v19  ;;  %v46_v58 = vld [vmem:[%s5768_s1 + $0x28] sm:$0xff]  ;;  %v47_v63 = vld [vmem:[%s5768_s1 + $0x30] sm:$0xff] }
  0x12   :  { %v4737_v59 = vsub.f32 %v4650_v54, %v5775_v8  ;;  %v284_v60 = vand.u32 4294901760, %v283_v6  ;;  %v291_v24 = vand.u32 4294901760, %v290_v9  ;;  %v304_v30 = vsub.f32 %v4629_v49, %v5777_v7 }
  0x13   :  { %3868 = vmatpush3.bf16.msra.mxu0 %v4595_v34  ;;  %5843 = vst [vmem:[#allocation6_spill] sm:$0xff] %v4715_v14  ;;  %v4752_v1 = vpack.c.bf16 %v5785_v16, %v5788_v5  ;;  %v5783_v2 = vand.u32 4294901760, %v4700_v17  ;;  %v5782_v3 = vand.u32 4294901760, %v4703_v18  ;;  %v4759_v6 = vsub.f32 %v4574_v25, %v112_v35  ;;  %v38_v25 = vld [vmem:[%s5767_s0 + $0x38] sm:$0xff] }
  0x14   :  { %3870 = vmatprep.subr.bf16.mxu0 %v4642_v52  ;;  %v4761_v9 = vpack.c.bf16 %v277_v27, %v270_v20  ;;  %v298_v8 = vand.u32 4294901760, %v297_v47  ;;  %v4764_v39 = vsub.f32 %v54_v12, %v4708_v50  ;;  %v56_v7 = vmul.f32 %v46_v58, %v36_v51  ;;  %v48_v35 = vld [vmem:[%s5768_s1 + $0x38] sm:$0xff] }
  0x15   :  { %5844 = vst [vmem:[#allocation7_spill] sm:$0xff] %v4752_v1  ;;  %v5786_v0 = vand.u32 4294901760, %v4718_v15  ;;  %v5787_v55 = vand.u32 4294901760, %v4723_v22  ;;  %v4770_v48 = vsub.f32 %v55_v19, %v4725_v23  ;;  %v57_v44 = vmul.f32 %v47_v63, %v37_v62 }
  0x16   :  { %v179_v12 = vand.u32 4294901760, %v4737_v59  ;;  %v4780_v20 = vpack.c.bf16 %v291_v24, %v284_v60  ;;  %v305_v27 = vand.u32 4294901760, %v304_v30  ;;  %v4782_v47 = vand.u32 4294901760, %v56_v7  ;;  %v39_v59 = vld [vmem:[%s5767_s0 + $0x40] sm:$0xff] }
  0x17   :  { %3872 = vmatpush3.bf16.msra.mxu0 %v4642_v52  ;;  %v311_v19 = vsub.f32 %v4700_v17, %v5783_v2  ;;  %v318_v51 = vsub.f32 %v4703_v18, %v5782_v3  ;;  %v5790_v58 = vand.u32 4294901760, %v4759_v6  ;;  %v4791_v62 = vand.u32 4294901760, %v57_v44  ;;  %v49_v60 = vld [vmem:[%s5768_s1 + $0x40] sm:$0xff] }
  0x18   :  { %3874 = vmatprep.subr.bf16.mxu0 %v4684_v4  ;;  %v5789_v24 = vand.u32 4294901760, %v4764_v39  ;;  %v4803_v30 = vsub.f32 %v4587_v31, %v115_v40  ;;  %v4806_v63 = vsub.f32 %v56_v7, %v4782_v47  ;;  %v58_v3 = vmul.f32 %v48_v35, %v38_v25 }
  0x19   :  { %v188_v2 = vsub.f32 %v4718_v15, %v5786_v0  ;;  %v4815_v43 = vsub.f32 %v4723_v22, %v5787_v55  ;;  %v5791_v16 = vand.u32 4294901760, %v4770_v48  ;;  %v4819_v31 = vsub.f32 %v57_v44, %v4791_v62 }
  0x1a   :  { %v4822_v40 = vpack.c.bf16 %v305_v27, %v298_v8  ;;  %v4827_v7 = vsub.f32 %v4601_v36, %v118_v46  ;;  %v4829_v25 = vand.u32 4294901760, %v58_v3  ;;  %v59_v35 = vmul.f32 %v49_v60, %v39_v59 }
  0x1b   :  { %3876 = vmatpush3.bf16.msra.mxu0 %v4684_v4  ;;  %5845 = vst [vmem:[#allocation8_spill] sm:$0xff] %v4819_v31  ;;  %v312_v0 = vand.u32 4294901760, %v311_v19  ;;  %v319_v55 = vand.u32 4294901760, %v318_v51  ;;  %v4834_v5 = vsub.f32 %v4759_v6, %v5790_v58  ;;  %v5800_v44 = vand.u32 4294901760, %v4806_v63  ;;  %v40_v19 = vld [vmem:[%s5767_s0 + $0x48] sm:$0x7] }
  0x1c   :  { %3878 = vmatprep.subr.bf16.mxu0 %v4715_v14  ;;  %v198_v8 = vsub.f32 %v4764_v39, %v5789_v24  ;;  %v4842_v36 = vsub.f32 %v58_v3, %v4829_v25  ;;  %v4844_v46 = vand.u32 4294901760, %v59_v35  ;;  %v50_v51 = vld [vmem:[%s5768_s1 + $0x48] sm:$0x7]  ;;  %v189_v59 = vand.u32 4294901760, %v188_v2 }
  0x1d   :  { %v326_v60 = vand.u32 4294901760, %v4815_v43  ;;  %v208_v3 = vsub.f32 %v4770_v48, %v5791_v16  ;;  %v338_v24 = vand.u32 4294901760, %v4803_v30  ;;  %v345_v58 = vand.u32 4294901760, %v4827_v7 }
  0x1e   :  { %5846 = vst [vmem:[#allocation9_spill] sm:$0xff] %v4842_v36  ;;  %v4863_v27 = vsub.f32 %v4612_v41, %v121_v56  ;;  %v4868_v2 = vsub.f32 %v4617_v42, %v124_v57  ;;  %v4871_v43 = vsub.f32 %v59_v35, %v4844_v46  ;;  %v218_v16 = vsub.f32 %v4806_v63, %v5800_v44 }
  0x1f   :  { %3880 = vmatpush3.bf16.msra.mxu0 %v4715_v14  ;;  %v5849_v41 = vand.u32 4294901760, %v4664_v61  ;;  %v60_v4 = vmul.f32 %v50_v51, %v40_v19  ;;  %v199_v42 = vand.u32 4294901760, %v198_v8  ;;  %v5850_v57 = vand.u32 4294901760, %v4819_v31 }
  0x20   :  { %3882 = vmatprep.subr.bf16.mxu0 %v4752_v1  ;;  %5847 = vst [vmem:[#allocation10_spill] sm:$0xff] %v4871_v43  ;;  %v5805_v52 = vand.u32 4294901760, %v4842_v36  ;;  %v5808_v44 = vand.u32 4294901760, %v4871_v43  ;;  %v209_v34 = vand.u32 4294901760, %v208_v3  ;;  %v346_v8 = vsub.f32 %v4827_v7, %v345_v58 }
  0x21   :  { %v4884_v56 = vsub.f32 %v4664_v61, %v5849_v41  ;;  %v228_v35 = vsub.f32 %v4819_v31, %v5850_v57  ;;  %v4893_v61 = vand.u32 4294901760, %v60_v4  ;;  %v352_v19 = vand.u32 4294901760, %v4863_v27 }
  0x22   :  { %v359_v51 = vand.u32 4294901760, %v4868_v2  ;;  %v219_v41 = vand.u32 4294901760, %v218_v16  ;;  %v248_v3 = vsub.f32 %v4871_v43, %v5808_v44  ;;  %v5851_v57 = vand.u32 4294901760, %v4578_v28 }
  0x23   :  { %3884 = vmatpush3.bf16.msra.mxu0 %v4752_v1  ;;  %v5848_v1 = vand.u32 4294901760, %v4647_v53  ;;  %v5852_v16 = vand.u32 4294901760, %v4580_v29  ;;  %v5858_v44 = vand.u32 4294901760, %v4629_v49 }
  0x24   :  { %3886 = vmatprep.subr.bf16.mxu0 %v4761_v9 }
  0x25   :  { %v4879_v14 = vsub.f32 %v4647_v53, %v5848_v1  ;;  %v3897_v53 = vpack.c.bf16 %v319_v55, %v312_v0  ;;  %v333_v1 = vand.u32 4294901760, %v4834_v5  ;;  %v373_v55 = vand.u32 4294901760, %v4884_v56 }
  0x26   :  { %3184 = vmatmul.mubr.f32.vlgmr.msra.gmra.mrb[0].mxu0 %v179_v12  ;;  %v339_v12 = vsub.f32 %v4803_v30, %v338_v24  ;;  %v4903_v0 = vsub.f32 %v60_v4, %v4893_v61  ;;  %v229_v5 = vand.u32 4294901760, %v228_v35  ;;  %v4915_v31 = vpack.c.bf16 %v5852_v16, %v5851_v57 }
  0x27   :  { %3888 = vmatpush3.bf16.msra.mxu0 %v4761_v9  ;;  %3186 = vmatprep.mubr.f32.mxu0 %v189_v59  ;;  %v366_v9 = vand.u32 4294901760, %v4879_v14  ;;  %v238_v59 = vsub.f32 %v4842_v36, %v5805_v52  ;;  %v5855_v35 = vand.u32 4294901760, %v4605_v38  ;;  %v5857_v36 = vand.u32 4294901760, %v4621_v45 }
  0x28   :  { %3890 = vmatprep.subr.bf16.mxu0 %v4780_v20  ;;  %5853 = vst [vmem:[#allocation11_spill] sm:$0xff] %v4915_v31  ;;  %v5860_v57 = vand.u32 4294901760, %v4700_v17  ;;  %v5861_v16 = vand.u32 4294901760, %v4703_v18  ;;  %v5864_v4 = vand.u32 4294901760, %v4759_v6  ;;  %v249_v31 = vand.u32 4294901760, %v248_v3 }
  0x29   :  { %v4929_v43 = vpack.c.bf16 %v5858_v44, %v5857_v36  ;;  %v4948_v44 = vpack.c.bf16 %v373_v55, %v366_v9  ;;  %v239_v36 = vand.u32 4294901760, %v238_v59 }
  0x2a   :  { %3187 = vmatmul.mubr.f32.gmra.mrb[2].mxu0 %v199_v42  ;;  %v5854_v42 = vand.u32 4294901760, %v4592_v33 }
  0x2b   :  { %3892 = vmatpush3.bf16.msra.mxu0 %v4780_v20  ;;  %3189 = vmatprep.mubr.f32.mxu0 %v209_v34  ;;  %5859 = vst [vmem:[#allocation13_spill] sm:$0xff] %v4929_v43  ;;  %v4935_v20 = vpack.c.bf16 %v5861_v16, %v5860_v57  ;;  %v5863_v34 = vand.u32 4294901760, %v4723_v22  ;;  %v5865_v43 = vand.u32 4294901760, %v4903_v0  ;;  %v340_v16 = vand.u32 4294901760, %v339_v12 }
  0x2c   :  { %v4923_v52 = vpack.c.bf16 %v5855_v35, %v5854_v42  ;;  %3894 = vmatprep.subr.bf16.mxu0 %v4822_v40  ;;  %v4944_v35 = vpack.c.bf16 %v345_v58, %v338_v24  ;;  %v353_v58 = vsub.f32 %v4863_v27, %v352_v19  ;;  %v360_v24 = vsub.f32 %v4868_v2, %v359_v51 }
  0x2d   :  { %5862 = vst [vmem:[#allocation14_spill] sm:$0xff] %v4935_v20  ;;  %v4942_v42 = vpack.c.bf16 %v5864_v4, %v5863_v34  ;;  %v258_v57 = vsub.f32 %v4903_v0, %v5865_v43  ;;  %v347_v20 = vand.u32 4294901760, %v346_v8  ;;  %v3901_v4 = vpack.c.bf16 %v333_v1, %v326_v60 }
  0x2e   :  { %5856 = vst [vmem:[#allocation12_spill] sm:$0xff] %v4923_v52  ;;  %v4946_v52 = vpack.c.bf16 %v359_v51, %v352_v19  ;;  %3190 = vmatmul.mubr.f32.gmra.mrb[4].mxu0 %v219_v41  ;;  %v354_v59 = vand.u32 4294901760, %v353_v58  ;;  %v361_v43 = vand.u32 4294901760, %v360_v24  ;;  %v374_v12 = vsub.f32 %v4884_v56, %v373_v55  ;;  %v5867_v24 = vld [vmem:[#allocation3_spill] sm:$0xff] }
  0x2f   :  { %3896 = vmatpush3.bf16.msra.mxu0 %v4822_v40  ;;  %3192 = vmatprep.mubr.f32.mxu0 %v229_v5  ;;  %v259_v34 = vand.u32 4294901760, %v258_v57  ;;  %v3905_v41 = vpack.c.bf16 %v347_v20, %v340_v16  ;;  %v367_v40 = vsub.f32 %v4879_v14, %v366_v9  ;;  %v3921_v19 = vpack.c.bf16 %v4605_v38, %v4592_v33  ;;  %v4984_v38 = vld [vmem:[%s5769_s4] sm:$0xff]  ;;  %v5034_v20 = vld [vmem:[%s5769_s4 + $0x30] sm:$0xff] }
  0x30   :  { %3898 = vmatprep.subr.bf16.mxu0 %v3897_v53  ;;  %v3909_v60 = vpack.c.bf16 %v361_v43, %v354_v59  ;;  %v375_v8 = vand.u32 4294901760, %v374_v12  ;;  %v3925_v51 = vpack.c.bf16 %v4629_v49, %v4621_v45  ;;  %v3937_v33 = vpack.c.bf16 %v4827_v7, %v4803_v30  ;;  %v4989_v45 = vld [vmem:[%s5769_s4 + $0x8] sm:$0xff]  ;;  %v4994_v49 = vld [vmem:[%s5769_s4 + $0x10] sm:$0xff]  ;;  %v5009_v7 = vld [vmem:[%s5769_s4 + $0x20] sm:$0xff] }
  0x31   :  { %v368_v1 = vand.u32 4294901760, %v367_v40  ;;  %v1152_v30 = vand.u32 4294901760, %v4994_v49  ;;  %v1158_v55 = vand.u32 4294901760, %v5009_v7  ;;  %v3945_v57 = vpack.c.bf16 %v4884_v56, %v4879_v14  ;;  %v5866_v56 = vld [vmem:[#allocation8_spill] sm:$0xff]  ;;  %v5872_v40 = vld [vmem:[#allocation5_spill] sm:$0xff]  ;;  %v5873_v12 = vld [vmem:[#allocation6_spill] sm:$0xff] }
  0x32   :  { %3193 = vmatmul.mubr.f32.gmra.mrb[6].mxu0 %v239_v36  ;;  %v5039_v36 = vld [vmem:[%s5769_s4 + $0x38] sm:$0xff]  ;;  %v5870_v59 = vld [vmem:[#allocation4_spill] sm:$0xff]  ;;  %v5871_v43 = vand.u32 4294901760, %v4590_v32 }
  0x33   :  { %3900 = vmatpush3.bf16.msra.mxu0 %v3897_v53  ;;  %3195 = vmatprep.mubr.f32.mxu0 %v249_v31  ;;  %v3913_v53 = vpack.c.bf16 %v375_v8, %v368_v1  ;;  %v3917_v31 = vpack.c.bf16 %v4580_v29, %v4578_v28  ;;  %v3929_v28 = vpack.c.bf16 %v4703_v18, %v4700_v17  ;;  %v1146_v18 = vand.u32 4294901760, %v4984_v38  ;;  %v5875_v1 = vld [vmem:[#allocation11_spill] sm:$0xff] }
  0x34   :  { %3902 = vmatprep.subr.bf16.mxu0 %v3901_v4  ;;  %v3933_v29 = vpack.c.bf16 %v4759_v6, %v4723_v22  ;;  %v3941_v17 = vpack.c.bf16 %v4868_v2, %v4863_v27  ;;  %v1149_v22 = vand.u32 4294901760, %v4989_v45  ;;  %v5003_v6 = vld [vmem:[%s5769_s4 + $0x18] sm:$0xff]  ;;  %v5014_v27 = vld [vmem:[%s5769_s4 + $0x28] sm:$0xff]  ;;  %v1167_v58 = vand.u32 4294901760, %v5039_v36 }
  0x35   :  { %v1155_v2 = vand.u32 4294901760, %v5003_v6  ;;  %v1161_v5 = vand.u32 4294901760, %v5014_v27  ;;  %v5876_v8 = vand.u32 4294901760, %v4650_v54 }
  0x36   :  { %3196 = vmatmul.mubr.f32.gmra.mrb[8].mxu0 %v259_v34  ;;  %v5021_v9 = vpack.c.bf16 %v1149_v22, %v1146_v18  ;;  %v5868_v34 = vld [vmem:[#allocation9_spill] sm:$0xff] }
  0x37   :  { %3904 = vmatpush3.bf16.msra.mxu0 %v3901_v4  ;;  %3230 = vmatprep.mubr.f32.mxu0 %v4576_v26  ;;  %v5029_v3 = vpack.c.bf16 %v1155_v2, %v1152_v30  ;;  %v5050_v16 = vpack.c.bf16 %v1161_v5, %v1158_v55  ;;  %v1164_v4 = vand.u32 4294901760, %v5034_v20 }
  0x38   :  { %3906 = vmatprep.subr.bf16.mxu0 %v3905_v41  ;;  %4046 = vmatprep.subr.bf16.mxu1 %v5021_v9 }
  0x39   :  { %4048 = vmatpush3.bf16.msra.mxu1 %v5021_v9  ;;  %v5060_v14 = vpack.c.bf16 %v1167_v58, %v1164_v4 }
  0x3a   :  { %4050 = vmatprep.subr.bf16.mxu1 %v5029_v3 }
  0x3b   :  { %3908 = vmatpush3.bf16.msra.mxu0 %v3905_v41  ;;  %v5869_v41 = vld [vmem:[#allocation10_spill] sm:$0xff] }
  0x3c   :  { %3910 = vmatprep.subr.bf16.mxu0 %v3909_v60 }
  0x3d   :  { %4052 = vmatpush3.bf16.msra.mxu1 %v5029_v3 }
  0x3e   :  { %4054 = vmatprep.subr.bf16.mxu1 %v5050_v16 }
  0x3f   :  { %3912 = vmatpush3.bf16.msra.mxu0 %v3909_v60  ;;  %v5874_v60 = vld [vmem:[#allocation7_spill] sm:$0xff] }
  0x40   :  { %3914 = vmatprep.subr.bf16.mxu0 %v3913_v53 }
  0x41   :  { %4056 = vmatpush3.bf16.msra.mxu1 %v5050_v16 }
  0x42   :  { %4058 = vmatprep.subr.bf16.mxu1 %v5060_v14 }
  0x43   :  { %3916 = vmatpush3.bf16.msra.mxu0 %v3913_v53  ;;  %v5878_v53 = vld [vmem:[#allocation12_spill] sm:$0xff] }
  0x44   :  { %3918 = vmatprep.subr.bf16.mxu0 %v3917_v31 }
  0x45   :  { %4060 = vmatpush3.bf16.msra.mxu1 %v5060_v14 }
  0x46   :  { %3231 = vmatmul.mubr.f32.vlgmr.msra.gmra.mrb[0].mxu0 %v4603_v37 }
  0x47   :  { %3920 = vmatpush3.bf16.msra.mxu0 %v3917_v31  ;;  %3233 = vmatprep.mubr.f32.mxu0 %v4696_v11  ;;  %v5879_v31 = vand.u32 4294901760, %v4764_v39 }
  0x48   :  { %3922 = vmatprep.subr.bf16.mxu0 %v3921_v19 }
  0x4a   :  { %3234 = vmatmul.mubr.f32.gmra.mrb[2].mxu0 %v4708_v50 }
  0x4b   :  { %3924 = vmatpush3.bf16.msra.mxu0 %v3921_v19  ;;  %3236 = vmatprep.mubr.f32.mxu0 %v4725_v23  ;;  %v5880_v19 = vand.u32 4294901760, %v4770_v48 }
  0x4c   :  { %3926 = vmatprep.subr.bf16.mxu0 %v3925_v51 }
  0x4e   :  { %3237 = vmatmul.mubr.f32.gmra.mrb[4].mxu0 %v4782_v47 }
  0x4f   :  { %3928 = vmatpush3.bf16.msra.mxu0 %v3925_v51  ;;  %3239 = vmatprep.mubr.f32.mxu0 %v4791_v62  ;;  %v5881_v51 = vld [vmem:[#allocation13_spill] sm:$0xff] }
  0x50   :  { %3930 = vmatprep.subr.bf16.mxu0 %v3929_v28 }
  0x52   :  { %3240 = vmatmul.mubr.f32.gmra.mrb[6].mxu0 %v4829_v25 }
  0x53   :  { %3932 = vmatpush3.bf16.msra.mxu0 %v3929_v28  ;;  %3242 = vmatprep.mubr.f32.mxu0 %v4844_v46  ;;  %v5884_v28 = vld [vmem:[#allocation14_spill] sm:$0xff] }
  0x54   :  { %3934 = vmatprep.subr.bf16.mxu0 %v3933_v29 }
  0x56   :  { %3243 = vmatmul.mubr.f32.gmra.mrb[8].mxu0 %v4893_v61 }
  0x57   :  { %3936 = vmatpush3.bf16.msra.mxu0 %v3933_v29  ;;  %3277 = vmatprep.mubr.f32.mxu0 %v4590_v32  ;;  %v5877_v32 = vand.u32 4294901760, %v4718_v15  ;;  %v1137_v29 = vld [vmem:[%s5769_s4 + $0x78] sm:$0xff] }
  0x58   :  { %3938 = vmatprep.subr.bf16.mxu0 %v3937_v33 }
  0x5b   :  { %3940 = vmatpush3.bf16.msra.mxu0 %v3937_v33 }
  0x5c   :  { %3942 = vmatprep.subr.bf16.mxu0 %v3941_v17 }
  0x5f   :  { %3944 = vmatpush3.bf16.msra.mxu0 %v3941_v17  ;;  %v1191_v17 = vand.u32 4294901760, %v1137_v29 }
  0x60   :  { %3946 = vmatprep.subr.bf16.mxu0 %v3945_v57 }
  0x63   :  { %3948 = vmatpush3.bf16.msra.mxu0 %v3945_v57 }
  0x64   :  { %3950 = vmatprep.subr.bf16.mxu0 %v4533_v10 }
  0x66   :  { %3278 = vmatmul.mubr.f32.vlgmr.msra.gmra.mrb[0].mxu0 %v4650_v54  ;;  %v5882_v54 = vand.u32 4294901760, %v4806_v63 }
  0x67   :  { %3952 = vmatpush3.bf16.msra.mxu0 %v4533_v10  ;;  %3280 = vmatprep.mubr.f32.mxu0 %v4718_v15  ;;  %v5883_v15 = vand.u32 4294901760, %v5866_v56 }
  0x68   :  { %3954 = vmatprep.subr.bf16.mxu0 %v4535_v13 }
  0x6a   :  { %3281 = vmatmul.mubr.f32.gmra.mrb[2].mxu0 %v4764_v39  ;;  %v5885_v39 = vand.u32 4294901760, %v5868_v34 }
  0x6b   :  { %3956 = vmatpush3.bf16.msra.mxu0 %v4535_v13  ;;  %3283 = vmatprep.mubr.f32.mxu0 %v4770_v48  ;;  %v5886_v48 = vand.u32 4294901760, %v5869_v41 }
  0x6c   :  { %3958 = vmatprep.subr.bf16.mxu0 %v4562_v21 }
  0x6e   :  { %3284 = vmatmul.mubr.f32.gmra.mrb[4].mxu0 %v4806_v63  ;;  %v5887_v63 = vand.u32 4294901760, %v4903_v0 }
  0x6f   :  { %3960 = vmatpush3.bf16.msra.mxu0 %v4562_v21  ;;  %3286 = vmatprep.mubr.f32.mxu0 %v5866_v56 }
  0x70   :  { %3962 = vmatprep.subr.bf16.mxu0 %v5867_v24 }
  0x72   :  { %3287 = vmatmul.mubr.f32.gmra.mrb[6].mxu0 %v5868_v34 }
  0x73   :  { %3964 = vmatpush3.bf16.msra.mxu0 %v5867_v24  ;;  %3289 = vmatprep.mubr.f32.mxu0 %v5869_v41 }
  0x74   :  { %3966 = vmatprep.subr.bf16.mxu0 %v5870_v59 }
  0x76   :  { %3290 = vmatmul.mubr.f32.gmra.mrb[8].mxu0 %v4903_v0 }
  0x77   :  { %3968 = vmatpush3.bf16.msra.mxu0 %v5870_v59  ;;  %3324 = vmatprep.mubr.f32.mxu0 %v5871_v43 }
  0x78   :  { %3970 = vmatprep.subr.bf16.mxu0 %v5872_v40 }
  0x7b   :  { %3972 = vmatpush3.bf16.msra.mxu0 %v5872_v40 }
  0x7c   :  { %3974 = vmatprep.subr.bf16.mxu0 %v5873_v12 }
  0x7f   :  { %3976 = vmatpush3.bf16.msra.mxu0 %v5873_v12 }
  0x80   :  { %3978 = vmatprep.subr.bf16.mxu0 %v5874_v60 }
  0x83   :  { %3980 = vmatpush3.bf16.msra.mxu0 %v5874_v60 }
  0x84   :  { %3982 = vmatprep.subr.bf16.mxu0 %v5875_v1 }
  0x86   :  { %3325 = vmatmul.mubr.f32.vlgmr.msra.gmra.mrb[0].mxu0 %v5876_v8 }
  0x87   :  { %3984 = vmatpush3.bf16.msra.mxu0 %v5875_v1  ;;  %3327 = vmatprep.mubr.f32.mxu0 %v5877_v32 }
  0x88   :  { %3986 = vmatprep.subr.bf16.mxu0 %v5878_v53 }
  0x8a   :  { %3328 = vmatmul.mubr.f32.gmra.mrb[2].mxu0 %v5879_v31 }
  0x8b   :  { %3988 = vmatpush3.bf16.msra.mxu0 %v5878_v53  ;;  %3330 = vmatprep.mubr.f32.mxu0 %v5880_v19 }
  0x8c   :  { %3990 = vmatprep.subr.bf16.mxu0 %v5881_v51 }
  0x8e   :  { %3331 = vmatmul.mubr.f32.gmra.mrb[4].mxu0 %v5882_v54 }
  0x8f   :  { %3992 = vmatpush3.bf16.msra.mxu0 %v5881_v51  ;;  %3333 = vmatprep.mubr.f32.mxu0 %v5883_v15 }
  0x90   :  { %3994 = vmatprep.subr.bf16.mxu0 %v5884_v28 }
  0x92   :  { %3334 = vmatmul.mubr.f32.gmra.mrb[6].mxu0 %v5885_v39 }
  0x93   :  { %3996 = vmatpush3.bf16.msra.mxu0 %v5884_v28  ;;  %3336 = vmatprep.mubr.f32.mxu0 %v5886_v48 }
  0x94   :  { %3998 = vmatprep.subr.bf16.mxu0 %v4942_v42 }
  0x96   :  { %3337 = vmatmul.mubr.f32.gmra.mrb[8].mxu0 %v5887_v63 }
  0x97   :  { %4000 = vmatpush3.bf16.msra.mxu0 %v4942_v42  ;;  %3371 = vmatprep.mubr.f32.mxu0 %v4576_v26  ;;  %v5193_v42 = vsub.f32 %v4984_v38, %v1146_v18 }
  0x98   :  { %4002 = vmatprep.subr.bf16.mxu0 %v4944_v35 }
  0x99   :  { %v5830_v38 = vand.u32 4294901760, %v5193_v42 }
  0x9b   :  { %4004 = vmatpush3.bf16.msra.mxu0 %v4944_v35  ;;  %v5198_v35 = vsub.f32 %v4989_v45, %v1149_v22  ;;  %v1330_v22 = vsub.f32 %v5193_v42, %v5830_v38 }
  0x9c   :  { %4006 = vmatprep.subr.bf16.mxu0 %v4946_v52 }
  0x9d   :  { %v5828_v18 = vand.u32 4294901760, %v5198_v35  ;;  %v1331_v56 = vand.u32 4294901760, %v1330_v22 }
  0x9f   :  { %4008 = vmatpush3.bf16.msra.mxu0 %v4946_v52  ;;  %v1132_v52 = vld [vmem:[%s5769_s4 + $0x50] sm:$0xff]  ;;  %v1337_v57 = vsub.f32 %v5198_v35, %v5828_v18 }
  0xa0   :  { %4010 = vmatprep.subr.bf16.mxu0 %v4948_v44 }
  0xa3   :  { %4012 = vmatpush3.bf16.msra.mxu0 %v4948_v44  ;;  %v1136_v44 = vld [vmem:[%s5769_s4 + $0x70] sm:$0xff] }
  0xa4   :  { %4014 = vmatprep.subr.bf16.mxu0 %v4533_v10  ;;  %v1188_v33 = vand.u32 4294901760, %v1136_v44 }
  0xa6   :  { %3372 = vmatmul.mubr.f32.vlgmr.msra.gmra.mrb[0].mxu0 %v4603_v37  ;;  %v5210_v45 = vpack.c.bf16 %v1191_v17, %v1188_v33 }
  0xa7   :  { %4016 = vmatpush3.bf16.msra.mxu0 %v4533_v10  ;;  %3374 = vmatprep.mubr.f32.mxu0 %v4696_v11  ;;  %v1130_v10 = vld [vmem:[%s5769_s4 + $0x40] sm:$0xff] }
  0xa8   :  { %4018 = vmatprep.subr.bf16.mxu0 %v4535_v13 }
  0xaa   :  { %3375 = vmatmul.mubr.f32.gmra.mrb[2].mxu0 %v4708_v50 }
  0xab   :  { %4020 = vmatpush3.bf16.msra.mxu0 %v4535_v13  ;;  %3377 = vmatprep.mubr.f32.mxu0 %v4725_v23  ;;  %v1131_v13 = vld [vmem:[%s5769_s4 + $0x48] sm:$0xff] }
  0xac   :  { %4022 = vmatprep.subr.bf16.mxu0 %v4562_v21 }
  0xae   :  { %3378 = vmatmul.mubr.f32.gmra.mrb[4].mxu0 %v4782_v47 }
  0xaf   :  { %4024 = vmatpush3.bf16.msra.mxu0 %v4562_v21  ;;  %3380 = vmatprep.mubr.f32.mxu0 %v4791_v62  ;;  %v1170_v21 = vand.u32 4294901760, %v1130_v10 }
  0xb0   :  { %4026 = vmatprep.subr.bf16.mxu0 %v5867_v24 }
  0xb1   :  { %v5223_v41 = vsub.f32 %v1130_v10, %v1170_v21 }
  0xb2   :  { %3381 = vmatmul.mubr.f32.gmra.mrb[6].mxu0 %v4829_v25 }
  0xb3   :  { %4028 = vmatpush3.bf16.msra.mxu0 %v5867_v24  ;;  %3383 = vmatprep.mubr.f32.mxu0 %v4844_v46  ;;  %v1338_v24 = vand.u32 4294901760, %v1337_v57  ;;  %v5822_v43 = vand.u32 4294901760, %v5223_v41  ;;  %v5281_v57 = vpack.c.bf16 %v5198_v35, %v5193_v42 }
  0xb4   :  { %4030 = vmatprep.subr.bf16.mxu0 %v5870_v59 }
  0xb5   :  { %v5220_v34 = vpack.c.bf16 %v1338_v24, %v1331_v56 }
  0xb6   :  { %3384 = vmatmul.mubr.f32.gmra.mrb[8].mxu0 %v4893_v61 }
  0xb7   :  { %4032 = vmatpush3.bf16.msra.mxu0 %v5870_v59  ;;  %3418 = vmatprep.mubr.f32.mxu0 %v4576_v26  ;;  %v1173_v26 = vand.u32 4294901760, %v1131_v13 }
  0xb8   :  { %4034 = vmatprep.subr.bf16.mxu0 %v5872_v40 }
  0xb9   :  { %v5225_v59 = vsub.f32 %v1131_v13, %v1173_v26 }
  0xbb   :  { %4036 = vmatpush3.bf16.msra.mxu0 %v5872_v40  ;;  %v5821_v40 = vand.u32 4294901760, %v5225_v59  ;;  %v5285_v56 = vpack.c.bf16 %v5225_v59, %v5223_v41 }
  0xbc   :  { %4038 = vmatprep.subr.bf16.mxu0 %v5873_v12 }
  0xbf   :  { %4040 = vmatpush3.bf16.msra.mxu0 %v5873_v12  ;;  %v1386_v12 = vsub.f32 %v5223_v41, %v5822_v43 }
  0xc0   :  { %4042 = vmatprep.subr.bf16.mxu0 %v5874_v60 }
  0xc1   :  { %v1387_v32 = vand.u32 4294901760, %v1386_v12 }
  0xc3   :  { %4044 = vmatpush3.bf16.msra.mxu0 %v5874_v60  ;;  %v1393_v60 = vsub.f32 %v5225_v59, %v5821_v40 }
  0xc5   :  { %v1394_v53 = vand.u32 4294901760, %v1393_v60 }
  0xc6   :  { %3419 = vmatmul.mubr.f32.vlgmr.msra.gmra.mrb[0].mxu0 %v4603_v37  ;;  %v5168_v37 = vpack.c.bf16 %v1173_v26, %v1170_v21 }
  0xc7   :  { %3421 = vmatprep.mubr.f32.mxu0 %v4696_v11  ;;  %v1133_v11 = vld [vmem:[%s5769_s4 + $0x58] sm:$0xff]  ;;  %v5241_v51 = vpack.c.bf16 %v1394_v53, %v1387_v32  ;;  %v5302_v32 = vsub.f32 %v4994_v49, %v1152_v30  ;;  %v5307_v53 = vsub.f32 %v5003_v6, %v1155_v2  ;;  %v5322_v49 = vld [vmem:[%s5770_s3] ss:$0 sm:$0xff] }
  0xc8   :  { %4062 = vmatprep.subr.bf16.mxu1 %v5168_v37 }
  0xc9   :  { %4064 = vmatpush3.bf16.msra.mxu1 %v5168_v37  ;;  %v5826_v30 = vand.u32 4294901760, %v5302_v32  ;;  %v5825_v6 = vand.u32 4294901760, %v5307_v53 }
  0xca   :  { %3422 = vmatmul.mubr.f32.gmra.mrb[2].mxu0 %v4708_v50  ;;  %v1176_v50 = vand.u32 4294901760, %v1132_v52 }
  0xcb   :  { %3424 = vmatprep.mubr.f32.mxu0 %v4725_v23  ;;  %v1179_v23 = vand.u32 4294901760, %v1133_v11 }
  0xcc   :  { %v5235_v1 = vsub.f32 %v1132_v52, %v1176_v50  ;;  %v5260_v52 = vsub.f32 %v1136_v44, %v1188_v33 }
  0xcd   :  { %v5237_v8 = vsub.f32 %v1133_v11, %v1179_v23  ;;  %v5262_v11 = vsub.f32 %v1137_v29, %v1191_v17 }
  0xce   :  { %3425 = vmatmul.mubr.f32.gmra.mrb[4].mxu0 %v4782_v47  ;;  %v5178_v47 = vpack.c.bf16 %v1179_v23, %v1176_v50  ;;  %v5820_v31 = vand.u32 4294901760, %v5235_v1  ;;  %5891 = vst [vmem:[#allocation10_spill] sm:$0xff] %v5260_v52 }
  0xcf   :  { %3427 = vmatprep.mubr.f32.mxu0 %v4791_v62  ;;  %v1134_v62 = vld [vmem:[%s5769_s4 + $0x60] sm:$0xff]  ;;  %5888 = vst [vmem:[#allocation8_spill] sm:$0xff] %v5237_v8  ;;  %v5819_v19 = vand.u32 4294901760, %v5237_v8  ;;  %5892 = vst [vmem:[#allocation4_spill] sm:$0xff] %v5262_v11  ;;  %v5289_v24 = vpack.c.bf16 %v5237_v8, %v5235_v1  ;;  %v5297_v60 = vpack.c.bf16 %v5262_v11, %v5260_v52 }
  0xd0   :  { %4066 = vmatprep.subr.bf16.mxu1 %v5178_v47  ;;  %v1400_v54 = vsub.f32 %v5235_v1, %v5820_v31 }
  0xd1   :  { %4068 = vmatpush3.bf16.msra.mxu1 %v5178_v47  ;;  %v1407_v15 = vsub.f32 %v5237_v8, %v5819_v19 }
  0xd2   :  { %3428 = vmatmul.mubr.f32.gmra.mrb[6].mxu0 %v4829_v25  ;;  %v1135_v25 = vld [vmem:[%s5769_s4 + $0x68] sm:$0xff]  ;;  %v1401_v48 = vand.u32 4294901760, %v1400_v54  ;;  %v5312_v54 = vsub.f32 %v5009_v7, %v1158_v55 }
  0xd3   :  { %3430 = vmatprep.mubr.f32.mxu0 %v4844_v46  ;;  %v1182_v46 = vand.u32 4294901760, %v1134_v62  ;;  %v1408_v63 = vand.u32 4294901760, %v1407_v15  ;;  %v5317_v15 = vsub.f32 %v5014_v27, %v1161_v5  ;;  %v1344_v5 = vsub.f32 %v5302_v32, %v5826_v30 }
  0xd4   :  { %v5824_v2 = vand.u32 4294901760, %v5312_v54 }
  0xd5   :  { %v5249_v28 = vsub.f32 %v1134_v62, %v1182_v46  ;;  %v5255_v21 = vpack.c.bf16 %v1408_v63, %v1401_v48  ;;  %v5816_v62 = vand.u32 4294901760, %v5260_v52  ;;  %v5823_v48 = vand.u32 4294901760, %v5317_v15 }
  0xd6   :  { %3431 = vmatmul.mubr.f32.gmra.mrb[8].mxu0 %v4893_v61  ;;  %v1185_v61 = vand.u32 4294901760, %v1135_v25 }
  0xd7   :  { %5889 = vst [vmem:[#allocation3_spill] sm:$0xff] %v5249_v28  ;;  %v5818_v10 = vand.u32 4294901760, %v5249_v28 }
  0xd8   :  { %v5188_v0 = vpack.c.bf16 %v1185_v61, %v1182_v46  ;;  %v5251_v39 = vsub.f32 %v1135_v25, %v1185_v61  ;;  %v5815_v25 = vand.u32 4294901760, %v5262_v11  ;;  %v1428_v61 = vsub.f32 %v5260_v52, %v5816_v62 }
  0xd9   :  { %v1414_v26 = vsub.f32 %v5249_v28, %v5818_v10  ;;  %v1345_v62 = vand.u32 4294901760, %v1344_v5 }
  0xda   :  { %4070 = vmatprep.subr.bf16.mxu1 %v5188_v0  ;;  %5890 = vst [vmem:[#allocation9_spill] sm:$0xff] %v5251_v39  ;;  %v5817_v13 = vand.u32 4294901760, %v5251_v39  ;;  %v1435_v44 = vsub.f32 %v5262_v11, %v5815_v25  ;;  %v1429_v33 = vand.u32 4294901760, %v1428_v61  ;;  %v5293_v12 = vpack.c.bf16 %v5251_v39, %v5249_v28 }
  0xdb   :  { %4072 = vmatpush3.bf16.msra.mxu1 %v5188_v0  ;;  %v1415_v23 = vand.u32 4294901760, %v1414_v26  ;;  %v1351_v26 = vsub.f32 %v5307_v53, %v5825_v6 }
  0xdc   :  { %4074 = vmatprep.subr.bf16.mxu1 %v5210_v45  ;;  %v1421_v50 = vsub.f32 %v5251_v39, %v5817_v13  ;;  %v1436_v17 = vand.u32 4294901760, %v1435_v44 }
  0xdd   :  { %v1352_v13 = vand.u32 4294901760, %v1351_v26 }
  0xde   :  { %v1422_v46 = vand.u32 4294901760, %v1421_v50  ;;  %v5277_v22 = vpack.c.bf16 %v1436_v17, %v1429_v33  ;;  %v5345_v33 = vsub.f32 %v5034_v20, %v1164_v4 }
  0xdf   :  { %4076 = vmatpush3.bf16.msra.mxu1 %v5210_v45 }
  0xe0   :  { %4078 = vmatprep.subr.bf16.mxu1 %v5220_v34  ;;  %v5275_v29 = vpack.c.bf16 %v1422_v46, %v1415_v23  ;;  %v1358_v23 = vsub.f32 %v5312_v54, %v5824_v2  ;;  %v1365_v46 = vsub.f32 %v5317_v15, %v5823_v48 }
  0xe2   :  { %v1359_v4 = vand.u32 4294901760, %v1358_v23  ;;  %v1366_v19 = vand.u32 4294901760, %v1365_v46 }
  0xe4   :  { %v4085_v48 = vpack.c.bf16 %v1366_v19, %v1359_v4 }
 0x199   :  { %v3420_v7 = vpop.f32.mrb[0].mxu0 }
 0x19a   :  { %v4327_v55 = vadd.f32 %v3420_v7, %v5322_v49  ;;  %v1054_v63 = vpop.f32.mrb[1].mxu0 }
 0x19b   :  { %v4328_v27 = vadd.f32 %v5322_v49, %v1054_v63  ;;  %v5353_v63 = vsub.f32 %v5039_v36, %v1167_v58  ;;  %v5829_v36 = vand.u32 4294901760, %v5345_v33 }
 0x19c   :  { %v1113_v50 = vmax.f32 %v4327_v55, 0.0 }
 0x19d   :  { %v1112_v61 = vmax.f32 %v4328_v27, 0.0  ;;  %v3423_v44 = vpop.f32.mrb[2].mxu0  ;;  %v5833_v26 = vand.u32 4294901760, %v5353_v63 }
 0x19e   :  { %v5347_v17 = vand.u32 4294901760, %v1113_v50  ;;  %v4329_v7 = vadd.f32 %v3423_v44, %v5322_v49  ;;  %v1066_v55 = vpop.f32.mrb[3].mxu0 }
 0x19f   :  { %v5355_v25 = vand.u32 4294901760, %v1112_v61  ;;  %v4330_v27 = vadd.f32 %v5322_v49, %v1066_v55 }
 0x1a0   :  { %v5359_v10 = vsub.f32 %v1113_v50, %v5347_v17  ;;  %v1115_v20 = vmax.f32 %v4329_v7, 0.0 }
 0x1a1   :  { %v5362_v44 = vsub.f32 %v1112_v61, %v5355_v25  ;;  %v1114_v31 = vmax.f32 %v4330_v27, 0.0  ;;  %v3426_v40 = vpop.f32.mrb[4].mxu0  ;;  %v4081_v61 = vpack.c.bf16 %v1352_v13, %v1345_v62  ;;  %v1372_v13 = vsub.f32 %v5345_v33, %v5829_v36 }
 0x1a2   :  { %v5365_v58 = vand.u32 4294901760, %v1115_v20  ;;  %v4331_v43 = vadd.f32 %v3426_v40, %v5322_v49  ;;  %v1078_v55 = vpop.f32.mrb[5].mxu0  ;;  %v5827_v5 = vand.u32 4294901760, %v5359_v10 }
 0x1a3   :  { %v5370_v50 = vand.u32 4294901760, %v1114_v31  ;;  %v4332_v23 = vadd.f32 %v5322_v49, %v1078_v55  ;;  %v5831_v46 = vand.u32 4294901760, %v5362_v44 }
 0x1a4   :  { %v5375_v7 = vsub.f32 %v1115_v20, %v5365_v58  ;;  %v1117_v27 = vmax.f32 %v4331_v43, 0.0  ;;  %v1239_v40 = vsub.f32 %v5359_v10, %v5827_v5 }
 0x1a5   :  { %v5381_v2 = vsub.f32 %v1114_v31, %v5370_v50  ;;  %v1116_v6 = vmax.f32 %v4332_v23, 0.0  ;;  %v3429_v30 = vpop.f32.mrb[6].mxu0  ;;  %v1229_v55 = vsub.f32 %v5362_v44, %v5831_v46  ;;  %v1379_v31 = vsub.f32 %v5353_v63, %v5833_v26 }
 0x1a6   :  { %v5389_v62 = vand.u32 4294901760, %v1117_v27  ;;  %v4333_v43 = vadd.f32 %v3429_v30, %v5322_v49  ;;  %v1090_v20 = vpop.f32.mrb[7].mxu0  ;;  %v5836_v19 = vand.u32 4294901760, %v5375_v7  ;;  %v1240_v46 = vand.u32 4294901760, %v1239_v40 }
 0x1a7   :  { %v5396_v4 = vand.u32 4294901760, %v1116_v6  ;;  %v4334_v23 = vadd.f32 %v5322_v49, %v1090_v20  ;;  %v1230_v5 = vand.u32 4294901760, %v1229_v55  ;;  %v5838_v18 = vand.u32 4294901760, %v5381_v2 }
 0x1a8   :  { %v5401_v36 = vsub.f32 %v1117_v27, %v5389_v62  ;;  %v1119_v38 = vmax.f32 %v4333_v43, 0.0  ;;  %v1259_v30 = vsub.f32 %v5375_v7, %v5836_v19  ;;  %v1373_v20 = vand.u32 4294901760, %v1372_v13 }
 0x1a9   :  { %v5407_v11 = vsub.f32 %v1116_v6, %v5396_v4  ;;  %v1118_v26 = vmax.f32 %v4334_v23, 0.0  ;;  %v3432_v52 = vpop.f32.mrb[8].mxu0  ;;  %3465 = vmatprep.mubr.f32.mxu1 %v1230_v5  ;;  %v1249_v55 = vsub.f32 %v5381_v2, %v5838_v18  ;;  %v1380_v19 = vand.u32 4294901760, %v1379_v31 }
 0x1aa   :  { %v5412_v39 = vand.u32 4294901760, %v1119_v38  ;;  %v4335_v27 = vadd.f32 %v3432_v52, %v5322_v49  ;;  %v1102_v40 = vpop.f32.mrb[9].mxu0  ;;  %3466 = vmatmul.mubr.f32.vlgmr.msra.gmra.mrb[0].mxu1 %v1240_v46  ;;  %v1278_v43 = vand.u32 4294901760, %v5401_v36  ;;  %v1260_v52 = vand.u32 4294901760, %v1259_v30 }
 0x1ab   :  { %v5416_v28 = vand.u32 4294901760, %v1118_v26  ;;  %v4336_v6 = vadd.f32 %v5322_v49, %v1102_v40  ;;  %4080 = vmatpush3.bf16.msra.mxu1 %v5220_v34  ;;  %v1250_v5 = vand.u32 4294901760, %v1249_v55  ;;  %v1268_v23 = vand.u32 4294901760, %v5407_v11 }
 0x1ac   :  { %v5422_v13 = vsub.f32 %v1119_v38, %v5412_v39  ;;  %v1121_v18 = vmax.f32 %v4335_v27, 0.0  ;;  %4082 = vmatprep.subr.bf16.mxu1 %v4081_v61  ;;  %v1279_v46 = vsub.f32 %v5401_v36, %v1278_v43 }
 0x1ad   :  { %v5428_v31 = vsub.f32 %v1118_v26, %v5416_v28  ;;  %v1120_v8 = vmax.f32 %v4336_v6, 0.0  ;;  %3468 = vmatprep.mubr.f32.mxu1 %v1250_v5  ;;  %v1269_v34 = vsub.f32 %v5407_v11, %v1268_v23  ;;  %v4089_v6 = vpack.c.bf16 %v1380_v19, %v1373_v20 }
 0x1ae   :  { %v5433_v49 = vand.u32 4294901760, %v1121_v18  ;;  %3469 = vmatmul.mubr.f32.gmra.mrb[2].mxu1 %v1260_v52  ;;  %v1298_v38 = vand.u32 4294901760, %v5422_v13  ;;  %v1280_v40 = vand.u32 4294901760, %v1279_v46 }
 0x1af   :  { %v5436_v55 = vand.u32 4294901760, %v1120_v8  ;;  %4084 = vmatpush3.bf16.msra.mxu1 %v4081_v61  ;;  %v1270_v30 = vand.u32 4294901760, %v1269_v34  ;;  %v1288_v27 = vand.u32 4294901760, %v5428_v31 }
 0x1b0   :  { %v5440_v26 = vsub.f32 %v1121_v18, %v5433_v49  ;;  %4086 = vmatprep.subr.bf16.mxu1 %v4085_v48  ;;  %v1299_v5 = vsub.f32 %v5422_v13, %v1298_v38 }
 0x1b1   :  { %v5446_v52 = vsub.f32 %v1120_v8, %v5436_v55  ;;  %3471 = vmatprep.mubr.f32.mxu1 %v1270_v30  ;;  %v1289_v61 = vsub.f32 %v5428_v31, %v1288_v27 }
 0x1b2   :  { %3472 = vmatmul.mubr.f32.gmra.mrb[4].mxu1 %v1280_v40  ;;  %v1318_v34 = vand.u32 4294901760, %v5440_v26  ;;  %v1300_v19 = vand.u32 4294901760, %v1299_v5  ;;  %v4113_v40 = vpack.c.bf16 %v5307_v53, %v5302_v32 }
 0x1b3   :  { %4088 = vmatpush3.bf16.msra.mxu1 %v4085_v48  ;;  %v1290_v18 = vand.u32 4294901760, %v1289_v61  ;;  %v1308_v46 = vand.u32 4294901760, %v5446_v52  ;;  %v5902_v61 = vand.u32 4294901760, %v5375_v7 }
 0x1b4   :  { %4090 = vmatprep.subr.bf16.mxu1 %v4089_v6  ;;  %v1319_v20 = vsub.f32 %v5440_v26, %v1318_v34 }
 0x1b5   :  { %3474 = vmatprep.mubr.f32.mxu1 %v1290_v18  ;;  %v1309_v8 = vsub.f32 %v5446_v52, %v1308_v46 }
 0x1b6   :  { %3475 = vmatmul.mubr.f32.gmra.mrb[6].mxu1 %v1300_v19  ;;  %v1320_v48 = vand.u32 4294901760, %v1319_v20 }
 0x1b7   :  { %4092 = vmatpush3.bf16.msra.mxu1 %v4089_v6  ;;  %v1310_v30 = vand.u32 4294901760, %v1309_v8  ;;  %v5899_v6 = vand.u32 4294901760, %v5381_v2 }
 0x1b8   :  { %4094 = vmatprep.subr.bf16.mxu1 %v5241_v51 }
 0x1b9   :  { %3477 = vmatprep.mubr.f32.mxu1 %v1310_v30 }
 0x1ba   :  { %3478 = vmatmul.mubr.f32.gmra.mrb[8].mxu1 %v1320_v48 }
 0x1bb   :  { %4096 = vmatpush3.bf16.msra.mxu1 %v5241_v51  ;;  %3512 = vmatprep.mubr.f32.mxu1 %v5355_v25  ;;  %v4117_v51 = vpack.c.bf16 %v5317_v15, %v5312_v54 }
 0x1bc   :  { %4098 = vmatprep.subr.bf16.mxu1 %v5255_v21 }
 0x1bf   :  { %4100 = vmatpush3.bf16.msra.mxu1 %v5255_v21  ;;  %v4121_v21 = vpack.c.bf16 %v5353_v63, %v5345_v33 }
 0x1c0   :  { %4102 = vmatprep.subr.bf16.mxu1 %v5275_v29 }
 0x1c3   :  { %4104 = vmatpush3.bf16.msra.mxu1 %v5275_v29  ;;  %v5893_v29 = vand.u32 4294901760, %v5362_v44 }
 0x1c4   :  { %4106 = vmatprep.subr.bf16.mxu1 %v5277_v22 }
 0x1c7   :  { %4108 = vmatpush3.bf16.msra.mxu1 %v5277_v22  ;;  %v5894_v22 = vand.u32 4294901760, %v5193_v42  ;;  %v5900_v42 = vand.u32 4294901760, %v5312_v54  ;;  %v5905_v54 = vand.u32 4294901760, %v5223_v41  ;;  %v5910_v41 = vld [vmem:[#allocation3_spill] sm:$0xff] }
 0x1c8   :  { %4110 = vmatprep.subr.bf16.mxu1 %v5281_v57 }
 0x1ca   :  { %3513 = vmatmul.mubr.f32.vlgmr.msra.gmra.mrb[0].mxu1 %v5347_v17 }
 0x1cb   :  { %3515 = vmatprep.mubr.f32.mxu1 %v5370_v50  ;;  %4112 = vmatpush3.bf16.msra.mxu1 %v5281_v57  ;;  %v5895_v57 = vand.u32 4294901760, %v5198_v35  ;;  %v5901_v35 = vand.u32 4294901760, %v5317_v15 }
 0x1cc   :  { %4114 = vmatprep.subr.bf16.mxu1 %v4113_v40 }
 0x1cd   :  { %v4181_v5 = vpack.c.bf16 %v5901_v35, %v5900_v42 }
 0x1ce   :  { %3516 = vmatmul.mubr.f32.gmra.mrb[2].mxu1 %v5365_v58 }
 0x1cf   :  { %3518 = vmatprep.mubr.f32.mxu1 %v5396_v4  ;;  %4116 = vmatpush3.bf16.msra.mxu1 %v4113_v40 }
 0x1d0   :  { %4118 = vmatprep.subr.bf16.mxu1 %v4117_v51 }
 0x1d2   :  { %3519 = vmatmul.mubr.f32.gmra.mrb[4].mxu1 %v5389_v62 }
 0x1d3   :  { %3521 = vmatprep.mubr.f32.mxu1 %v5416_v28  ;;  %4120 = vmatpush3.bf16.msra.mxu1 %v4117_v51 }
 0x1d4   :  { %4122 = vmatprep.subr.bf16.mxu1 %v4121_v21 }
 0x1d6   :  { %3522 = vmatmul.mubr.f32.gmra.mrb[6].mxu1 %v5412_v39 }
 0x1d7   :  { %3524 = vmatprep.mubr.f32.mxu1 %v5436_v55  ;;  %4124 = vmatpush3.bf16.msra.mxu1 %v4121_v21 }
 0x1d8   :  { %4126 = vmatprep.subr.bf16.mxu1 %v5285_v56 }
 0x1da   :  { %3525 = vmatmul.mubr.f32.gmra.mrb[8].mxu1 %v5433_v49 }
 0x1db   :  { %4128 = vmatpush3.bf16.msra.mxu1 %v5285_v56  ;;  %3559 = vmatprep.mubr.f32.mxu1 %v5362_v44  ;;  %v4173_v56 = vpack.c.bf16 %v5895_v57, %v5894_v22  ;;  %v5898_v44 = vand.u32 4294901760, %v5359_v10 }
 0x1dc   :  { %4130 = vmatprep.subr.bf16.mxu1 %v5289_v24 }
 0x1df   :  { %4132 = vmatpush3.bf16.msra.mxu1 %v5289_v24  ;;  %v5896_v24 = vand.u32 4294901760, %v5302_v32  ;;  %v5904_v32 = vand.u32 4294901760, %v5353_v63 }
 0x1e0   :  { %4134 = vmatprep.subr.bf16.mxu1 %v5293_v12 }
 0x1e3   :  { %4136 = vmatpush3.bf16.msra.mxu1 %v5293_v12  ;;  %v5897_v12 = vand.u32 4294901760, %v5307_v53 }
 0x1e4   :  { %4138 = vmatprep.subr.bf16.mxu1 %v5297_v60 }
 0x1e7   :  { %4140 = vmatpush3.bf16.msra.mxu1 %v5297_v60  ;;  %v4177_v60 = vpack.c.bf16 %v5897_v12, %v5896_v24 }
 0x1e8   :  { %4142 = vmatprep.subr.bf16.mxu1 %v5021_v9 }
 0x1ea   :  { %3560 = vmatmul.mubr.f32.vlgmr.msra.gmra.mrb[0].mxu1 %v5359_v10  ;;  %v5903_v10 = vand.u32 4294901760, %v5345_v33  ;;  %v5908_v33 = vld [vmem:[#allocation8_spill] sm:$0xff] }
 0x1eb   :  { %3562 = vmatprep.mubr.f32.mxu1 %v5381_v2  ;;  %4144 = vmatpush3.bf16.msra.mxu1 %v5021_v9  ;;  %v5907_v2 = vand.u32 4294901760, %v5235_v1  ;;  %v5909_v63 = vand.u32 4294901760, %v5908_v33  ;;  %v5916_v1 = vld [vmem:[#allocation4_spill] sm:$0xff] }
 0x1ec   :  { %4146 = vmatprep.subr.bf16.mxu1 %v5029_v3  ;;  %v4185_v53 = vpack.c.bf16 %v5904_v32, %v5903_v10 }
 0x1ee   :  { %3563 = vmatmul.mubr.f32.gmra.mrb[2].mxu1 %v5375_v7  ;;  %v5912_v7 = vld [vmem:[#allocation9_spill] sm:$0xff] }
 0x1ef   :  { %3565 = vmatprep.mubr.f32.mxu1 %v5407_v11  ;;  %4148 = vmatpush3.bf16.msra.mxu1 %v5029_v3  ;;  %v5906_v11 = vand.u32 4294901760, %v5225_v59  ;;  %v5911_v59 = vand.u32 4294901760, %v5910_v41 }
 0x1f0   :  { %4150 = vmatprep.subr.bf16.mxu1 %v5050_v16 }
 0x1f1   :  { %v4189_v15 = vpack.c.bf16 %v5906_v11, %v5905_v54 }
 0x1f2   :  { %3566 = vmatmul.mubr.f32.gmra.mrb[4].mxu1 %v5401_v36  ;;  %v4193_v36 = vpack.c.bf16 %v5909_v63, %v5907_v2 }
 0x1f3   :  { %3568 = vmatprep.mubr.f32.mxu1 %v5428_v31  ;;  %4152 = vmatpush3.bf16.msra.mxu1 %v5050_v16 }
 0x1f4   :  { %4154 = vmatprep.subr.bf16.mxu1 %v5060_v14 }
 0x1f6   :  { %3569 = vmatmul.mubr.f32.gmra.mrb[6].mxu1 %v5422_v13  ;;  %v5914_v13 = vld [vmem:[#allocation10_spill] sm:$0xff] }
 0x1f7   :  { %3571 = vmatprep.mubr.f32.mxu1 %v5446_v52  ;;  %4156 = vmatpush3.bf16.msra.mxu1 %v5060_v14  ;;  %v5915_v31 = vand.u32 4294901760, %v5914_v13 }
 0x1f8   :  { %4158 = vmatprep.subr.bf16.mxu1 %v5168_v37 }
 0x1fa   :  { %3572 = vmatmul.mubr.f32.gmra.mrb[8].mxu1 %v5440_v26 }
 0x1fb   :  { %4160 = vmatpush3.bf16.msra.mxu1 %v5168_v37  ;;  %3606 = vmatprep.mubr.f32.mxu1 %v5893_v29 }
 0x1fc   :  { %4162 = vmatprep.subr.bf16.mxu1 %v5178_v47 }
 0x1ff   :  { %4164 = vmatpush3.bf16.msra.mxu1 %v5178_v47 }
 0x200   :  { %4166 = vmatprep.subr.bf16.mxu1 %v5188_v0 }
 0x203   :  { %4168 = vmatpush3.bf16.msra.mxu1 %v5188_v0 }
 0x204   :  { %4170 = vmatprep.subr.bf16.mxu1 %v5210_v45 }
 0x207   :  { %4172 = vmatpush3.bf16.msra.mxu1 %v5210_v45 }
 0x208   :  { %4174 = vmatprep.subr.bf16.mxu1 %v4173_v56 }
 0x20a   :  { %3607 = vmatmul.mubr.f32.vlgmr.msra.gmra.mrb[0].mxu1 %v5898_v44 }
 0x20b   :  { %3609 = vmatprep.mubr.f32.mxu1 %v5899_v6  ;;  %4176 = vmatpush3.bf16.msra.mxu1 %v4173_v56 }
 0x20c   :  { %4178 = vmatprep.subr.bf16.mxu1 %v4177_v60 }
 0x20e   :  { %3610 = vmatmul.mubr.f32.gmra.mrb[2].mxu1 %v5902_v61 }
 0x20f   :  { %3612 = vmatprep.mubr.f32.mxu1 %v1268_v23  ;;  %4180 = vmatpush3.bf16.msra.mxu1 %v4177_v60 }
 0x210   :  { %4182 = vmatprep.subr.bf16.mxu1 %v4181_v5 }
 0x212   :  { %3613 = vmatmul.mubr.f32.gmra.mrb[4].mxu1 %v1278_v43  ;;  %v5913_v43 = vand.u32 4294901760, %v5912_v7 }
 0x213   :  { %3615 = vmatprep.mubr.f32.mxu1 %v1288_v27  ;;  %4184 = vmatpush3.bf16.msra.mxu1 %v4181_v5 }
 0x214   :  { %4186 = vmatprep.subr.bf16.mxu1 %v4185_v53  ;;  %v4197_v23 = vpack.c.bf16 %v5913_v43, %v5911_v59 }
 0x216   :  { %3616 = vmatmul.mubr.f32.gmra.mrb[6].mxu1 %v1298_v38  ;;  %v5917_v38 = vand.u32 4294901760, %v5916_v1 }
 0x217   :  { %3618 = vmatprep.mubr.f32.mxu1 %v1308_v46  ;;  %4188 = vmatpush3.bf16.msra.mxu1 %v4185_v53 }
 0x218   :  { %4190 = vmatprep.subr.bf16.mxu1 %v4189_v15  ;;  %v4201_v27 = vpack.c.bf16 %v5917_v38, %v5915_v31 }
 0x21a   :  { %3619 = vmatmul.mubr.f32.gmra.mrb[8].mxu1 %v1318_v34 }
 0x21b   :  { %4192 = vmatpush3.bf16.msra.mxu1 %v4189_v15  ;;  %3653 = vmatprep.mubr.f32.mxu1 %v5355_v25 }
 0x21c   :  { %4194 = vmatprep.subr.bf16.mxu1 %v4193_v36 }
 0x21f   :  { %4196 = vmatpush3.bf16.msra.mxu1 %v4193_v36 }
 0x220   :  { %4198 = vmatprep.subr.bf16.mxu1 %v4197_v23 }
 0x223   :  { %4200 = vmatpush3.bf16.msra.mxu1 %v4197_v23 }
 0x224   :  { %4202 = vmatprep.subr.bf16.mxu1 %v4201_v27 }
 0x227   :  { %4204 = vmatpush3.bf16.msra.mxu1 %v4201_v27 }
 0x228   :  { %4206 = vmatprep.subr.bf16.mxu1 %v5021_v9 }
 0x22a   :  { %3654 = vmatmul.mubr.f32.vlgmr.msra.gmra.mrb[0].mxu1 %v5347_v17 }
 0x22b   :  { %3656 = vmatprep.mubr.f32.mxu1 %v5370_v50  ;;  %4208 = vmatpush3.bf16.msra.mxu1 %v5021_v9  ;;  %v4466_v9 = vmov 0.0|0.0  }
 0x22c   :  { %4210 = vmatprep.subr.bf16.mxu1 %v5029_v3  ;;  %4282 = vmatprep.subr.bf16.mxu0 %v4466_v9 }
 0x22e   :  { %3657 = vmatmul.mubr.f32.gmra.mrb[2].mxu1 %v5365_v58 }
 0x22f   :  { %3659 = vmatprep.mubr.f32.mxu1 %v5396_v4  ;;  %4212 = vmatpush3.bf16.msra.mxu1 %v5029_v3  ;;  %v4468_v3 = vmov 0.0  }
 0x230   :  { %4214 = vmatprep.subr.bf16.mxu1 %v5050_v16  ;;  %3804 = vmatprep.mubr.msk.f32.mxu0 %vm4467_vm0, %v4468_v3 }
 0x232   :  { %3660 = vmatmul.mubr.f32.gmra.mrb[4].mxu1 %v5389_v62 }
 0x233   :  { %3662 = vmatprep.mubr.f32.mxu1 %v5416_v28  ;;  %4216 = vmatpush3.bf16.msra.mxu1 %v5050_v16  ;;  %v5616_v16 = vld [vmem:[%s5771_s5] ss:$0 sm:$0xff] }
 0x234   :  { %4218 = vmatprep.subr.bf16.mxu1 %v5060_v14 }
 0x236   :  { %3663 = vmatmul.mubr.f32.gmra.mrb[6].mxu1 %v5412_v39 }
 0x237   :  { %3665 = vmatprep.mubr.f32.mxu1 %v5436_v55  ;;  %4220 = vmatpush3.bf16.msra.mxu1 %v5060_v14 }
 0x238   :  { %4222 = vmatprep.subr.bf16.mxu1 %v5168_v37 }
 0x23a   :  { %3666 = vmatmul.mubr.f32.gmra.mrb[8].mxu1 %v5433_v49 }
 0x23b   :  { %4224 = vmatpush3.bf16.msra.mxu1 %v5168_v37  ;;  %3700 = vmatprep.mubr.f32.mxu1 %v5355_v25 }
 0x23c   :  { %4226 = vmatprep.subr.bf16.mxu1 %v5178_v47 }
 0x23f   :  { %4228 = vmatpush3.bf16.msra.mxu1 %v5178_v47 }
 0x240   :  { %4230 = vmatprep.subr.bf16.mxu1 %v5188_v0 }
 0x243   :  { %4232 = vmatpush3.bf16.msra.mxu1 %v5188_v0 }
 0x244   :  { %4234 = vmatprep.subr.bf16.mxu1 %v5210_v45 }
 0x247   :  { %4236 = vmatpush3.bf16.msra.mxu1 %v5210_v45  ;;  %v4469_v45 = vmov 0  }
 0x248   :  { %4237 = vmatprep.subr.bf16.mxu1 %v4466_v9  ;;  %4461 = vset.pattern.permute.xlu0 %v4469_v45 }
 0x24a   :  { %3701 = vmatmul.mubr.f32.vlgmr.msra.gmra.mrb[0].mxu1 %v5347_v17 }
 0x24b   :  { %3703 = vmatprep.mubr.f32.mxu1 %v5370_v50 }
 0x24e   :  { %3704 = vmatmul.mubr.f32.gmra.mrb[2].mxu1 %v5365_v58 }
 0x24f   :  { %3706 = vmatprep.mubr.f32.mxu1 %v5396_v4 }
 0x252   :  { %3707 = vmatmul.mubr.f32.gmra.mrb[4].mxu1 %v5389_v62 }
 0x253   :  { %3709 = vmatprep.mubr.f32.mxu1 %v5416_v28  ;;  %v13_v28 = vstv %s5772_s7 }
 0x254   :  { %14 = vst [vmem:[#allocation2] sm:$0x1] %v13_v28 }
 0x256   :  { %3710 = vmatmul.mubr.f32.gmra.mrb[6].mxu1 %v5412_v39 }
 0x257   :  { %3712 = vmatprep.mubr.f32.mxu1 %v5436_v55 }
 0x25a   :  { %3713 = vmatmul.mubr.f32.gmra.mrb[8].mxu1 %v5433_v49 }
 0x25b   :  { %3735 = vmatprep.mubr.msk.f32.mxu1 %vm4467_vm0, %v4468_v3  ;;  %v2771_v29 = vld [vmem:[#allocation2] ss:$0 sm:$0xff] }
 0x25c   :  { %2191 = vperm.xlu0 %4461, %v2771_v29  }
 0x31d   :  { %v3702_v14 = vpop.f32.mrb[0].mxu1 }
 0x31e   :  { %v4337_v37 = vadd.f32 %v3702_v14, %v5616_v16  ;;  %v2115_v47 = vpop.f32.mrb[1].mxu1 }
 0x31f   :  { %v4338_v0 = vadd.f32 %v5616_v16, %v2115_v47 }
 0x320   :  { %v2174_v39 = vmax.f32 %v4337_v37, 0.0 }
 0x321   :  { %v2173_v25 = vmax.f32 %v4338_v0, 0.0  ;;  %v3705_v17 = vpop.f32.mrb[2].mxu1 }
 0x322   :  { %v2198_v58 = vand.u32 4294901760, %v2174_v39  ;;  %v4339_v50 = vadd.f32 %v3705_v17, %v5616_v16  ;;  %v2127_v62 = vpop.f32.mrb[3].mxu1 }
 0x323   :  { %v2195_v4 = vand.u32 4294901760, %v2173_v25  ;;  %v4340_v49 = vadd.f32 %v5616_v16, %v2127_v62 }
 0x324   :  { %v5625_v55 = vsub.f32 %v2174_v39, %v2198_v58  ;;  %v2176_v26 = vmax.f32 %v4339_v50, 0.0 }
 0x325   :  { %v5627_v52 = vpack.c.bf16 %v2198_v58, %v2195_v4  ;;  %v5629_v34 = vsub.f32 %v2173_v25, %v2195_v4  ;;  %v2175_v18 = vmax.f32 %v4340_v49, 0.0  ;;  %v3708_v46 = vpop.f32.mrb[4].mxu1 }
 0x326   :  { %v2289_v19 = vand.u32 4294901760, %v5625_v55  ;;  %v2204_v20 = vand.u32 4294901760, %v2176_v26  ;;  %v4341_v8 = vadd.f32 %v3708_v46, %v5616_v16  ;;  %v2139_v30 = vpop.f32.mrb[5].mxu1 }
 0x327   :  { %v2282_v48 = vand.u32 4294901760, %v5629_v34  ;;  %v2201_v40 = vand.u32 4294901760, %v2175_v18  ;;  %v4342_v51 = vadd.f32 %v5616_v16, %v2139_v30  ;;  %4239 = vmatpush3.bf16.xpose.msra.mxu1 %v5627_v52  ;;  %4284 = vmatpush3.bf16.xpose.msra.mxu0 %v5627_v52  ;;  %v4268_v21 = vpack.c.bf16 %v5625_v55, %v5629_v34 }
 0x328   :  { %v2290_v22 = vsub.f32 %v5625_v55, %v2289_v19  ;;  %v5640_v57 = vsub.f32 %v2176_v26, %v2204_v20  ;;  %v2178_v56 = vmax.f32 %v4341_v8, 0.0  ;;  %4240 = vmatprep.subr.bf16.mxu1 %v4466_v9  ;;  %4285 = vmatprep.subr.bf16.mxu0 %v4466_v9 }
 0x329   :  { %v2283_v24 = vsub.f32 %v5629_v34, %v2282_v48  ;;  %v5645_v12 = vpack.c.bf16 %v2204_v20, %v2201_v40  ;;  %v5647_v60 = vsub.f32 %v2175_v18, %v2201_v40  ;;  %v2177_v44 = vmax.f32 %v4342_v51, 0.0  ;;  %v3711_v6 = vpop.f32.mrb[6].mxu1 }
 0x32a   :  { %v2291_v42 = vand.u32 4294901760, %v2290_v22  ;;  %v2303_v35 = vand.u32 4294901760, %v5640_v57  ;;  %v2210_v5 = vand.u32 4294901760, %v2178_v56  ;;  %v4343_v61 = vadd.f32 %v3711_v6, %v5616_v16  ;;  %v2151_v10 = vpop.f32.mrb[7].mxu1 }
 0x32b   :  { %v2284_v32 = vand.u32 4294901760, %v2283_v24  ;;  %v2296_v53 = vand.u32 4294901760, %v5647_v60  ;;  %v2207_v54 = vand.u32 4294901760, %v2177_v44  ;;  %v4344_v11 = vadd.f32 %v5616_v16, %v2151_v10 }
 0x32c   :  { %v2304_v15 = vsub.f32 %v5640_v57, %v2303_v35  ;;  %v5654_v2 = vsub.f32 %v2178_v56, %v2210_v5  ;;  %v2180_v33 = vmax.f32 %v4343_v61, 0.0  ;;  %v5656_v63 = vpack.c.bf16 %v2289_v19, %v2282_v48 }
 0x32d   :  { %v2297_v36 = vsub.f32 %v5647_v60, %v2296_v53  ;;  %v5659_v41 = vpack.c.bf16 %v2210_v5, %v2207_v54  ;;  %v5661_v59 = vsub.f32 %v2177_v44, %v2207_v54  ;;  %v2179_v7 = vmax.f32 %v4344_v11, 0.0  ;;  %v3714_v43 = vpop.f32.mrb[8].mxu1  ;;  %v2183_v5 = vld [vmem:[%s5773_s6] sm:$0xf] }
 0x32e   :  { %v2305_v23 = vand.u32 4294901760, %v2304_v15  ;;  %v2317_v13 = vand.u32 4294901760, %v5654_v2  ;;  %v2216_v31 = vand.u32 4294901760, %v2180_v33  ;;  %v4345_v1 = vadd.f32 %v3714_v43, %v5616_v16  ;;  %v2163_v38 = vpop.f32.mrb[9].mxu1 }
 0x32f   :  { %v2298_v27 = vand.u32 4294901760, %v2297_v36  ;;  %v2310_v14 = vand.u32 4294901760, %v5661_v59  ;;  %v2213_v37 = vand.u32 4294901760, %v2179_v7  ;;  %v4346_v47 = vadd.f32 %v5616_v16, %v2163_v38  ;;  %4242 = vmatpush3.bf16.xpose.msra.mxu1 %v5645_v12  ;;  %4287 = vmatpush3.bf16.xpose.msra.mxu0 %v5645_v12 }
 0x330   :  { %v2318_v0 = vsub.f32 %v5654_v2, %v2317_v13  ;;  %v5670_v45 = vsub.f32 %v2180_v33, %v2216_v31  ;;  %v2182_v28 = vmax.f32 %v4345_v1, 0.0  ;;  %4243 = vmatprep.subr.bf16.mxu1 %v4466_v9  ;;  %4288 = vmatprep.subr.bf16.mxu0 %v4466_v9  ;;  %v4253_v39 = vpack.c.bf16 %v2291_v42, %v2284_v32 }
 0x331   :  { %v2311_v25 = vsub.f32 %v5661_v59, %v2310_v14  ;;  %v5675_v17 = vpack.c.bf16 %v2216_v31, %v2213_v37  ;;  %v5677_v58 = vsub.f32 %v2179_v7, %v2213_v37  ;;  %v2181_v16 = vmax.f32 %v4346_v47, 0.0 }
 0x332   :  { %v2319_v50 = vand.u32 4294901760, %v2318_v0  ;;  %v2331_v62 = vand.u32 4294901760, %v5670_v45  ;;  %v2222_v4 = vand.u32 4294901760, %v2182_v28  ;;  %v4256_v49 = vpack.c.bf16 %v2305_v23, %v2298_v27 }
 0x333   :  { %v2312_v26 = vand.u32 4294901760, %v2311_v25  ;;  %v2324_v18 = vand.u32 4294901760, %v5677_v58  ;;  %v2219_v46 = vand.u32 4294901760, %v2181_v16  ;;  %v4301_v19 = vpack.c.bf16 %v2303_v35, %v2296_v53 }
 0x334   :  { %v2332_v20 = vsub.f32 %v5670_v45, %v2331_v62  ;;  %v5682_v8 = vsub.f32 %v2182_v28, %v2222_v4  ;;  %v4304_v30 = vpack.c.bf16 %v2317_v13, %v2310_v14  ;;  %v4271_v48 = vpack.c.bf16 %v5640_v57, %v5647_v60 }
 0x335   :  { %v2325_v40 = vsub.f32 %v5677_v58, %v2324_v18  ;;  %v5687_v51 = vpack.c.bf16 %v2222_v4, %v2219_v46  ;;  %v5689_v29 = vsub.f32 %v2181_v16, %v2219_v46  ;;  %v4259_v22 = vpack.c.bf16 %v2319_v50, %v2312_v26 }
 0x336   :  { %v2333_v56 = vand.u32 4294901760, %v2332_v20  ;;  %v2345_v24 = vand.u32 4294901760, %v5682_v8  ;;  %v4307_v44 = vpack.c.bf16 %v2331_v62, %v2324_v18  ;;  %v4274_v6 = vpack.c.bf16 %v5654_v2, %v5661_v59 }
 0x337   :  { %v2326_v42 = vand.u32 4294901760, %v2325_v40  ;;  %v2338_v35 = vand.u32 4294901760, %v5689_v29  ;;  %4245 = vmatpush3.bf16.xpose.msra.mxu1 %v5659_v41  ;;  %4290 = vmatpush3.bf16.xpose.msra.mxu0 %v5659_v41  ;;  %v4277_v61 = vpack.c.bf16 %v5670_v45, %v5677_v58  ;;  %v4280_v10 = vpack.c.bf16 %v5682_v8, %v5689_v29 }
 0x338   :  { %v2346_v32 = vsub.f32 %v5682_v8, %v2345_v24  ;;  %4246 = vmatprep.subr.bf16.mxu1 %v4466_v9  ;;  %4291 = vmatprep.subr.bf16.mxu0 %v4466_v9  ;;  %v2269_v33 = vand.u32 4294901760, %v2183_v5 }
 0x339   :  { %v2339_v53 = vsub.f32 %v5689_v29, %v2338_v35  ;;  %v4262_v54 = vpack.c.bf16 %v2333_v56, %v2326_v42  ;;  %v4310_v11 = vpack.c.bf16 %v2345_v24, %v2338_v35 }
 0x33a   :  { %v2347_v15 = vand.u32 4294901760, %v2346_v32  ;;  %v2270_v43 = vsub.f32 %v2183_v5, %v2269_v33 }
 0x33b   :  { %v2340_v36 = vand.u32 4294901760, %v2339_v53 }
 0x33c   :  { %v2271_v23 = vand.u32 4294901760, %v2270_v43 }
 0x33d   :  { %v4265_v7 = vpack.c.bf16 %v2347_v15, %v2340_v36 }
 0x33e   :  { %v2272_v13 = vsub.f32 %v2270_v43, %v2271_v23 }
 0x33f   :  { %4248 = vmatpush3.bf16.xpose.msra.mxu1 %v5675_v17  ;;  %4293 = vmatpush3.bf16.xpose.msra.mxu0 %v5675_v17 }
 0x340   :  { %4249 = vmatprep.subr.bf16.mxu1 %v4466_v9  ;;  %4294 = vmatprep.subr.bf16.mxu0 %v4466_v9  ;;  %v2273_v31 = vand.u32 4294901760, %v2272_v13 }
 0x347   :  { %4251 = vmatpush3.bf16.xpose.msra.mxu1 %v5687_v51  ;;  %4296 = vmatpush3.bf16.xpose.msra.mxu0 %v5687_v51 }
 0x348   :  { %4252 = vmatprep.subr.bf16.mxu1 %v4466_v9  ;;  %4297 = vmatprep.subr.bf16.mxu0 %v4466_v9 }
 0x34e   :  { %3736 = vmatmul.mubr.f32.vlgmr.msra.gmra.mrb[10].mxu1 %v2273_v31  ;;  %3805 = vmatmul.mubr.f32.vlgmr.msra.gmra.mrb[10].mxu0 %v2271_v23 }
 0x34f   :  { %4254 = vmatpush3.bf16.xpose.msra.mxu1 %v4253_v39  ;;  %4299 = vmatpush3.bf16.xpose.msra.mxu0 %v5656_v63 }
 0x350   :  { %4255 = vmatprep.subr.bf16.mxu1 %v4466_v9  ;;  %4300 = vmatprep.subr.bf16.mxu0 %v4466_v9 }
 0x351   :  { %3758 = vmatprep.mubr.msk.f32.mxu1 %vm4467_vm0, %v4468_v3  ;;  %3827 = vmatprep.mubr.msk.f32.mxu0 %vm4467_vm0, %v4468_v3 }
 0x357   :  { %4257 = vmatpush3.bf16.xpose.msra.mxu1 %v4256_v49  ;;  %4302 = vmatpush3.bf16.xpose.msra.mxu0 %v4301_v19 }
 0x358   :  { %4258 = vmatprep.subr.bf16.mxu1 %v4466_v9  ;;  %4303 = vmatprep.subr.bf16.mxu0 %v4466_v9 }
 0x35f   :  { %4260 = vmatpush3.bf16.xpose.msra.mxu1 %v4259_v22  ;;  %4305 = vmatpush3.bf16.xpose.msra.mxu0 %v4304_v30 }
 0x360   :  { %4261 = vmatprep.subr.bf16.mxu1 %v4466_v9  ;;  %4306 = vmatprep.subr.bf16.mxu0 %v4466_v9 }
 0x367   :  { %4263 = vmatpush3.bf16.xpose.msra.mxu1 %v4262_v54  ;;  %4308 = vmatpush3.bf16.xpose.msra.mxu0 %v4307_v44 }
 0x368   :  { %4264 = vmatprep.subr.bf16.mxu1 %v4466_v9  ;;  %4309 = vmatprep.subr.bf16.mxu0 %v4466_v9 }
 0x36f   :  { %4266 = vmatpush3.bf16.xpose.msra.mxu1 %v4265_v7  ;;  %4311 = vmatpush3.bf16.xpose.msra.mxu0 %v4310_v11 }
 0x370   :  { %4267 = vmatprep.subr.bf16.mxu1 %v4466_v9  ;;  %4312 = vmatprep.subr.bf16.mxu0 %v4466_v9 }
 0x376   :  { %3759 = vmatmul.mubr.f32.vlgmr.msra.gmra.mrb[10].mxu1 %v2269_v33  ;;  %3828 = vmatmul.mubr.f32.vlgmr.msra.gmra.mrb[10].mxu0 %v2269_v33 }
 0x377   :  { %4269 = vmatpush3.bf16.xpose.msra.mxu1 %v4268_v21  ;;  %4314 = vmatpush3.bf16.xpose.msra.mxu0 %v5627_v52 }
 0x378   :  { %4270 = vmatprep.subr.bf16.mxu1 %v4466_v9  ;;  %4315 = vmatprep.subr.bf16.mxu0 %v4466_v9 }
 0x379   :  { %3781 = vmatprep.mubr.msk.f32.mxu1 %vm4467_vm0, %v4468_v3  ;;  %3850 = vmatprep.mubr.msk.f32.mxu0 %vm4467_vm0, %v4468_v3  ;;  %v2192_v3 = vpop.permute.xlu0 %2191 }
 0x37f   :  { %4272 = vmatpush3.bf16.xpose.msra.mxu1 %v4271_v48  ;;  %4317 = vmatpush3.bf16.xpose.msra.mxu0 %v5645_v12 }
 0x380   :  { %4273 = vmatprep.subr.bf16.mxu1 %v4466_v9  ;;  %4318 = vmatprep.subr.bf16.mxu0 %v4466_v9 }
 0x387   :  { %4275 = vmatpush3.bf16.xpose.msra.mxu1 %v4274_v6  ;;  %4320 = vmatpush3.bf16.xpose.msra.mxu0 %v5659_v41 }
 0x388   :  { %4276 = vmatprep.subr.bf16.mxu1 %v4466_v9  ;;  %4321 = vmatprep.subr.bf16.mxu0 %v4466_v9 }
 0x38f   :  { %4278 = vmatpush3.bf16.xpose.msra.mxu1 %v4277_v61  ;;  %4323 = vmatpush3.bf16.xpose.msra.mxu0 %v5675_v17 }
 0x390   :  { %4279 = vmatprep.subr.bf16.mxu1 %v4466_v9  ;;  %4324 = vmatprep.subr.bf16.mxu0 %v4466_v9 }
 0x397   :  { %4281 = vmatpush3.bf16.xpose.msra.mxu1 %v4280_v10  ;;  %4326 = vmatpush3.bf16.xpose.msra.mxu0 %v5687_v51 }
 0x39e   :  { %3782 = vmatmul.mubr.f32.vlgmr.msra.gmra.mrb[10].mxu1 %v2270_v43  ;;  %3851 = vmatmul.mubr.f32.vlgmr.msra.gmra.mrb[10].mxu0 %v2269_v33 }
 0x471   :  { %v2488_v55 = vpop.f32.mrb[10].mxu1  ;;  %v2753_v52 = vpop.f32.mrb[10].mxu0 }
 0x472   :  { %v4347_v34 = vadd.f32 %v2488_v55, %v2192_v3  ;;  %v3783_v21 = vpop.f32.mrb[11].mxu1  ;;  %v3852_v57 = vpop.f32.mrb[11].mxu0 }
 0x474   :  { %v4348_v12 = vadd.f32 %v4347_v34, %v2753_v52 }
 0x476   :  { %v2772_v60 = vmul.f32 -1.442695, %v4348_v12 }
 0x478   :  { %4462 = vpow2.f32 %v2772_v60 }
 0x482   :  { %v4463_v2 = vpop.eup %4462 }
 0x483   :  { %v2760_v63 = vadd.f32 1.0, %v4463_v2 }
 0x485   :  { %4464 = vrcp.f32 %v2760_v63 }
 0x48f   :  { %v4465_v9 = vpop.eup %4464 }
 0x490   :  { %2764 = vst.msk [vmem:[%s5774_s8] sm:$0xf] %vm2763_vm1, %v4465_v9 }

</bundles_post_ra>
